<compile_context>
chip_gen: v5e
topology: v5e:2x2
jax: 0.10.0
libtpu: 0.0.40
codegen_flags: <defaults>
</compile_context>

<pallas_src>
import functools

import numpy as np

import jax
import jax.numpy as jnp
from jax import lax
from jax.experimental import pallas as pl
from jax.experimental.pallas import tpu as pltpu

HIDDEN = 32        # hidden channels of the synthetic inner CNN
MAX_LANES = 8192   # per-block lane budget (conservative for v7x 64 MiB VMEM)


def _cnn_net_kernel(x_ref, mask_ref, w1_ref, b1s_ref, w2_ref, b2_ref, out_ref,
                    *, row_stride):
    """Fused 2-layer 3x3 'same' CNN, channels on sublanes / (b,h,w) on lanes.

    x_ref    : (Cin, L)        L = Bblk*H*W flattened spatial on lanes
    mask_ref : (9, L)  f32     precomputed per-tap boundary masks (0/1)
    w1_ref   : (HID, 9*Cin)    conv1 weights, tap-major / channel-minor columns
    b1s_ref  : (HID, 1)        conv1 bias with sigma already folded in
    w2_ref   : (Cout, 9*HID)   conv2 weights, tap-major / channel-minor columns
    b2_ref   : (Cout, 1)
    out_ref  : (Cout, L)
    """
    cin, L = x_ref.shape
    hid = b1s_ref.shape[0]
    cout = out_ref.shape[0]

    x = x_ref[...]                                   # (Cin, L) f32
    taps = [(dh, dw) for dh in (-1, 0, 1) for dw in (-1, 0, 1)]

    def tap_view(a, t, dh, dw):
        # a[:, l + dh*row_stride + dw], zeroed outside the image.  Lane-roll
        # wrap-around always coincides with a masked tap (lb = whole images).
        if dh == 0 and dw == 0:
            return a                                 # center tap: always valid
        s = dh * row_stride + dw
        rolled = a if s == 0 else pltpu.roll(a, shift=(-s) % L, axis=1)
        return rolled * mask_ref[t:t + 1, :]

    # ---- conv1 (3x3 SAME): VPU weighted sum of rolled+masked input rows ----
    acc1 = jnp.zeros((hid, L), jnp.float32)
    for t, (dh, dw) in enumerate(taps):
        xt = tap_view(x, t, dh, dw)                  # (Cin, L)
        for c in range(cin):
            w_col = w1_ref[:, t * cin + c:t * cin + c + 1]      # (HID, 1)
            acc1 = acc1 + w_col * xt[c:c + 1, :]     # outer-product accumulate
    h = jnp.maximum(acc1 + b1s_ref[...], 0.0)        # bias (+sigma) + ReLU

    # ---- conv2 (3x3 SAME): 9 accumulating tap matmuls on the MXU ----
    acc2 = jnp.zeros((cout, L), jnp.float32)
    for t, (dh, dw) in enumerate(taps):
        ht = tap_view(h, t, dh, dw)                  # (HID, L)
        w_tap = w2_ref[:, t * hid:(t + 1) * hid]     # (Cout, HID)
        acc2 = acc2 + jnp.dot(w_tap, ht, preferred_element_type=jnp.float32)
    out_ref[...] = (acc2 + b2_ref[...]).astype(out_ref.dtype)


def _make_tap_masks(d1, d2, lb):
    """(9, lb) 0/1 f32 masks; lane pattern only depends on position mod d1*d2."""
    lane = np.arange(lb, dtype=np.int64)
    row = (lane // d2) % d1
    col = lane % d2
    out = []
    for dh in (-1, 0, 1):
        for dw in (-1, 0, 1):
            out.append((row + dh >= 0) & (row + dh < d1) &
                       (col + dw >= 0) & (col + dw < d2))
    return np.stack(out).astype(np.float32)


def _pick_batch_block(B, hw, *, max_lanes=MAX_LANES, min_blocks=2):
    """Batch block: 128-aligned lanes, fits the lane budget, prefers grid>=2."""
    if hw > max_lanes:
        # TODO(synk): halo-tiled (H-tiling, 1-row halo) path for large images.
        raise NotImplementedError(
            f"H*W={hw} exceeds the single-block lane budget ({max_lanes}).")
    aligned = [bb for bb in range(1, B + 1)
               if B % bb == 0 and bb * hw <= max_lanes and (bb * hw) % 128 == 0]
    if aligned:
        pref = [bb for bb in aligned if B // bb >= min_blocks]  # keep 2 TCs busy
        return max(pref) if pref else max(aligned)
    if B * hw <= max_lanes:
        return B   # full-extent block is always spec-legal (masked stores)
    raise NotImplementedError(
        "TODO(synk): no 128-aligned batch split fits the lane budget; "
        "needs the halo-tiled path.")


def net_forward_flat(x_cl, dims, sigma, prepped):
    """Run the synthetic inner CNN on (Cin, B*d1*d2) channels-on-sublanes data."""
    w1_m, b1, w2_m, b2_c = prepped
    B, d1, d2 = dims
    cin = x_cl.shape[0]
    hid = w1_m.shape[0]
    cout = w2_m.shape[0]
    L = B * d1 * d2

    b1s = (b1 + jnp.float32(sigma)).reshape(hid, 1)   # fold sigma into conv1 bias

    bb = _pick_batch_block(B, d1 * d2)
    lb = bb * d1 * d2
    grid = (B // bb,)
    mask = jnp.asarray(_make_tap_masks(d1, d2, lb))   # (9, lb), fetched once

    kern = functools.partial(_cnn_net_kernel, row_stride=d2)
    y_cl = pl.pallas_call(
        kern,
        out_shape=jax.ShapeDtypeStruct((cout, L), jnp.float32),
        grid_spec=pltpu.PrefetchScalarGridSpec(
            num_scalar_prefetch=0,
            grid=grid,
            in_specs=[
                pl.BlockSpec((cin, lb), lambda i: (0, i)),
                pl.BlockSpec((9, lb), lambda i: (0, 0)),
                pl.BlockSpec((hid, 9 * cin), lambda i: (0, 0)),
                pl.BlockSpec((hid, 1), lambda i: (0, 0)),
                pl.BlockSpec((cout, 9 * hid), lambda i: (0, 0)),
                pl.BlockSpec((cout, 1), lambda i: (0, 0)),
            ],
            out_specs=pl.BlockSpec((cout, lb), lambda i: (0, i)),
        ),
        compiler_params=pltpu.CompilerParams(
            dimension_semantics=("parallel",),
            vmem_limit_bytes=32 * 1024 * 1024),
    )(x_cl.astype(jnp.float32), mask, w1_m, b1s, w2_m, b2_c)
    return y_cl


def make_net_params(cin, hidden, key):
    """Deterministic synthetic weights for the 2-layer CNN (HWIO layout)."""
    k1, k2, k3, k4 = jax.random.split(key, 4)
    w1 = jax.random.normal(k1, (3, 3, cin, hidden), jnp.float32) * 0.1
    b1 = jax.random.normal(k2, (hidden,), jnp.float32) * 0.1
    w2 = jax.random.normal(k3, (3, 3, hidden, cin), jnp.float32) * 0.1
    b2 = jax.random.normal(k4, (cin,), jnp.float32) * 0.1
    return w1, b1, w2, b2


def prep_net_params(params):
    """HWIO conv weights -> tap-major/channel-minor matmul layout (done once)."""
    w1, b1, w2, b2 = params
    cin, hid = w1.shape[2], w1.shape[3]
    cout = w2.shape[3]
    w1_m = w1.transpose(3, 0, 1, 2).reshape(hid, 9 * cin)
    w2_m = w2.transpose(3, 0, 1, 2).reshape(cout, 9 * hid)
    return w1_m, b1, w2_m, b2.reshape(cout, 1)


class CNNBlockPallas:
    """JAX/Pallas equivalent of CNNBlock.forward dtype/shape dispatch."""

    def __init__(self, hidden=HIDDEN, key=jax.random.PRNGKey(0)):
        k_c, k_r = jax.random.split(key)
        # TODO(synk): the original `net` is an injected constructor; we use a
        # synthetic 2-layer CNN (2-ch params for complex, 1-ch for real input).
        self.params_c = make_net_params(2, hidden, k_c)
        self.params_r = make_net_params(1, hidden, k_r)
        self.prep_c = prep_net_params(self.params_c)
        self.prep_r = prep_net_params(self.params_r)

    def __call__(self, x, sigma=None):
        if x.dtype == jnp.complex64:
            b, d1, d2 = x.shape
            # view_as_real -> channels-on-sublanes; pure stack+reshape, no transpose
            x_cl = jnp.stack([jnp.real(x), jnp.imag(x)], axis=0).reshape(2, -1)
            y_cl = net_forward_flat(x_cl, (b, d1, d2), sigma, self.prep_c)
            y = y_cl.reshape(2, b, d1, d2)
            return (y[0] + 1j * y[1]).astype(jnp.complex64)
        elif x.dtype == jnp.float32 and x.ndim == 2:
            # TODO(synk): original float branches call net(x) without sigma.
            d1, d2 = x.shape
            y_cl = net_forward_flat(x.reshape(1, -1), (1, d1, d2), 0.0, self.prep_r)
            return y_cl.reshape(d1, d2)
        elif x.dtype == jnp.float32 and x.ndim == 3:
            b, d1, d2 = x.shape
            y_cl = net_forward_flat(x.reshape(1, -1), (b, d1, d2), 0.0, self.prep_r)
            return y_cl.reshape(b, d1, d2)
        else:
            raise NotImplementedError()


def _net_ref_nhwc(x_nhwc, sigma, params):
    """Pure-JAX reference for correctness checking."""
    w1, b1, w2, b2 = params
    dn1 = lax.conv_dimension_numbers(x_nhwc.shape, w1.shape,
                                     ('NHWC', 'HWIO', 'NHWC'))
    h = lax.conv_general_dilated(x_nhwc, w1, (1, 1), 'SAME',
                                 dimension_numbers=dn1)
    h = jnp.maximum(h + b1 + sigma, 0.0)
    dn2 = lax.conv_dimension_numbers(h.shape, w2.shape,
                                     ('NHWC', 'HWIO', 'NHWC'))
    y = lax.conv_general_dilated(h, w2, (1, 1), 'SAME',
                                 dimension_numbers=dn2)
    return y + b2


if __name__ == "__main__":
    key = jax.random.PRNGKey(0)
    k_data, k_params = jax.random.split(key)
    block = CNNBlockPallas(key=k_params)

    b, w, h = 2, 16, 16
    k_re, k_im = jax.random.split(k_data)

    # --- complex64 branch (uses sigma) ---
    x_c = (jax.random.normal(k_re, (b, w, h), jnp.float32)
           + 1j * jax.random.normal(k_im, (b, w, h), jnp.float32)
           ).astype(jnp.complex64)
    sigma = 0.1
    out_c = block(x_c, sigma)
    jax.block_until_ready(out_c)

    x_hat = jnp.stack([jnp.real(x_c), jnp.imag(x_c)], axis=-1)
    ref = _net_ref_nhwc(x_hat, sigma, block.params_c)
    ref_c = ref[..., 0] + 1j * ref[..., 1]
    assert out_c.shape == x_c.shape and out_c.dtype == jnp.complex64
    assert jnp.allclose(out_c, ref_c, atol=1e-4, rtol=1e-4)

    # --- float32 3-D branch (no sigma, matches PyTorch call signature) ---
    x_r = jax.random.normal(k_re, (b, w, h), jnp.float32)
    out_r = block(x_r)
    jax.block_until_ready(out_r)
    assert out_r.shape == (b, w, h)
    ref_r = _net_ref_nhwc(x_r[:, :, :, None], 0.0, block.params_r)[..., 0]
    assert jnp.allclose(out_r, ref_r, atol=1e-4, rtol=1e-4)

    # --- float32 2-D branch ---
    x_2d = jax.random.normal(k_im, (w, h), jnp.float32)
    out_2d = block(x_2d)
    jax.block_until_ready(out_2d)
    assert out_2d.shape == (w, h)
    ref_2d = _net_ref_nhwc(x_2d[None, :, :, None], 0.0,
                           block.params_r)[0, :, :, 0]
    assert jnp.allclose(out_2d, ref_2d, atol=1e-4, rtol=1e-4)

    print("KERNEL_OK")
</pallas_src>

<mosaic_0001>
module attributes {stable_mosaic.version = 11 : i64} {
  func.func @_cnn_net_kernel(%arg0: i32, %arg1: memref<2x256xf32, #tpu.memory_space<vmem>>, %arg2: memref<9x256xf32, #tpu.memory_space<vmem>>, %arg3: memref<32x18xf32, #tpu.memory_space<vmem>>, %arg4: memref<32x1xf32, #tpu.memory_space<vmem>>, %arg5: memref<2x288xf32, #tpu.memory_space<vmem>>, %arg6: memref<2x1xf32, #tpu.memory_space<vmem>>, %arg7: memref<2x256xf32, #tpu.memory_space<vmem>>) attributes {dimension_semantics = [#tpu.dimension_semantics<parallel>], iteration_bounds = array<i64: 2>, scalar_prefetch = 0 : i64, scratch_operands = 0 : i64, tpu.core_type = #tpu.core_type<tc>, window_params = [{transform_indices = @transform_0, window_bounds = array<i64: 2, 256>}, {pipeline_mode = #tpu.pipeline_mode<synchronous>, transform_indices = @transform_1, window_bounds = array<i64: 9, 256>}, {pipeline_mode = #tpu.pipeline_mode<synchronous>, transform_indices = @transform_2, window_bounds = array<i64: 32, 18>}, {pipeline_mode = #tpu.pipeline_mode<synchronous>, transform_indices = @transform_3, window_bounds = array<i64: 32, 1>}, {pipeline_mode = #tpu.pipeline_mode<synchronous>, transform_indices = @transform_4, window_bounds = array<i64: 2, 288>}, {pipeline_mode = #tpu.pipeline_mode<synchronous>, transform_indices = @transform_5, window_bounds = array<i64: 2, 1>}, {transform_indices = @transform_6, window_bounds = array<i64: 2, 256>}]} {
    %c0 = arith.constant 0 : index
    %c0_0 = arith.constant 0 : index
    %0 = vector.load %arg1[%c0, %c0_0] : memref<2x256xf32, #tpu.memory_space<vmem>>, vector<2x256xf32>
    %cst = arith.constant 0.000000e+00 : f32
    %1 = vector.broadcast %cst : f32 to vector<32x256xf32>
    %c17_i32 = arith.constant 17 : i32
    %2 = tpu.dynamic_rotate %0 by %c17_i32 dim 1 : vector<2x256xf32>, i32 -> vector<2x256xf32>
    %c0_1 = arith.constant 0 : index
    %c0_2 = arith.constant 0 : index
    %3 = vector.load %arg2[%c0_1, %c0_2] : memref<9x256xf32, #tpu.memory_space<vmem>>, vector<1x256xf32>
    %4 = vector.broadcast %3 : vector<1x256xf32> to vector<2x256xf32>
    %5 = arith.mulf %2, %4 : vector<2x256xf32>
    %c0_3 = arith.constant 0 : index
    %c0_4 = arith.constant 0 : index
    %6 = vector.load %arg3[%c0_3, %c0_4] : memref<32x18xf32, #tpu.memory_space<vmem>>, vector<32x1xf32>
    %7 = vector.extract_strided_slice %5 {offsets = [0, 0], sizes = [1, 256], strides = [1, 1]} : vector<2x256xf32> to vector<1x256xf32>
    %8 = vector.broadcast %6 : vector<32x1xf32> to vector<32x256xf32>
    %9 = vector.broadcast %7 : vector<1x256xf32> to vector<32x256xf32>
    %10 = arith.mulf %8, %9 : vector<32x256xf32>
    %11 = arith.addf %1, %10 : vector<32x256xf32>
    %c0_5 = arith.constant 0 : index
    %c1 = arith.constant 1 : index
    %12 = vector.load %arg3[%c0_5, %c1] : memref<32x18xf32, #tpu.memory_space<vmem>>, vector<32x1xf32>
    %13 = vector.extract_strided_slice %5 {offsets = [1, 0], sizes = [1, 256], strides = [1, 1]} : vector<2x256xf32> to vector<1x256xf32>
    %14 = vector.broadcast %12 : vector<32x1xf32> to vector<32x256xf32>
    %15 = vector.broadcast %13 : vector<1x256xf32> to vector<32x256xf32>
    %16 = arith.mulf %14, %15 : vector<32x256xf32>
    %17 = arith.addf %11, %16 : vector<32x256xf32>
    %c16_i32 = arith.constant 16 : i32
    %18 = tpu.dynamic_rotate %0 by %c16_i32 dim 1 : vector<2x256xf32>, i32 -> vector<2x256xf32>
    %c1_6 = arith.constant 1 : index
    %c0_7 = arith.constant 0 : index
    %19 = vector.load %arg2[%c1_6, %c0_7] : memref<9x256xf32, #tpu.memory_space<vmem>>, vector<1x256xf32>
    %20 = vector.broadcast %19 : vector<1x256xf32> to vector<2x256xf32>
    %21 = arith.mulf %18, %20 : vector<2x256xf32>
    %c0_8 = arith.constant 0 : index
    %c2 = arith.constant 2 : index
    %22 = vector.load %arg3[%c0_8, %c2] : memref<32x18xf32, #tpu.memory_space<vmem>>, vector<32x1xf32>
    %23 = vector.extract_strided_slice %21 {offsets = [0, 0], sizes = [1, 256], strides = [1, 1]} : vector<2x256xf32> to vector<1x256xf32>
    %24 = vector.broadcast %22 : vector<32x1xf32> to vector<32x256xf32>
    %25 = vector.broadcast %23 : vector<1x256xf32> to vector<32x256xf32>
    %26 = arith.mulf %24, %25 : vector<32x256xf32>
    %27 = arith.addf %17, %26 : vector<32x256xf32>
    %c0_9 = arith.constant 0 : index
    %c3 = arith.constant 3 : index
    %28 = vector.load %arg3[%c0_9, %c3] : memref<32x18xf32, #tpu.memory_space<vmem>>, vector<32x1xf32>
    %29 = vector.extract_strided_slice %21 {offsets = [1, 0], sizes = [1, 256], strides = [1, 1]} : vector<2x256xf32> to vector<1x256xf32>
    %30 = vector.broadcast %28 : vector<32x1xf32> to vector<32x256xf32>
    %31 = vector.broadcast %29 : vector<1x256xf32> to vector<32x256xf32>
    %32 = arith.mulf %30, %31 : vector<32x256xf32>
    %33 = arith.addf %27, %32 : vector<32x256xf32>
    %c15_i32 = arith.constant 15 : i32
    %34 = tpu.dynamic_rotate %0 by %c15_i32 dim 1 : vector<2x256xf32>, i32 -> vector<2x256xf32>
    %c2_10 = arith.constant 2 : index
    %c0_11 = arith.constant 0 : index
    %35 = vector.load %arg2[%c2_10, %c0_11] : memref<9x256xf32, #tpu.memory_space<vmem>>, vector<1x256xf32>
    %36 = vector.broadcast %35 : vector<1x256xf32> to vector<2x256xf32>
    %37 = arith.mulf %34, %36 : vector<2x256xf32>
    %c0_12 = arith.constant 0 : index
    %c4 = arith.constant 4 : index
    %38 = vector.load %arg3[%c0_12, %c4] : memref<32x18xf32, #tpu.memory_space<vmem>>, vector<32x1xf32>
    %39 = vector.extract_strided_slice %37 {offsets = [0, 0], sizes = [1, 256], strides = [1, 1]} : vector<2x256xf32> to vector<1x256xf32>
    %40 = vector.broadcast %38 : vector<32x1xf32> to vector<32x256xf32>
    %41 = vector.broadcast %39 : vector<1x256xf32> to vector<32x256xf32>
    %42 = arith.mulf %40, %41 : vector<32x256xf32>
    %43 = arith.addf %33, %42 : vector<32x256xf32>
    %c0_13 = arith.constant 0 : index
    %c5 = arith.constant 5 : index
    %44 = vector.load %arg3[%c0_13, %c5] : memref<32x18xf32, #tpu.memory_space<vmem>>, vector<32x1xf32>
    %45 = vector.extract_strided_slice %37 {offsets = [1, 0], sizes = [1, 256], strides = [1, 1]} : vector<2x256xf32> to vector<1x256xf32>
    %46 = vector.broadcast %44 : vector<32x1xf32> to vector<32x256xf32>
    %47 = vector.broadcast %45 : vector<1x256xf32> to vector<32x256xf32>
    %48 = arith.mulf %46, %47 : vector<32x256xf32>
    %49 = arith.addf %43, %48 : vector<32x256xf32>
    %c1_i32 = arith.constant 1 : i32
    %50 = tpu.dynamic_rotate %0 by %c1_i32 dim 1 : vector<2x256xf32>, i32 -> vector<2x256xf32>
    %c3_14 = arith.constant 3 : index
    %c0_15 = arith.constant 0 : index
    %51 = vector.load %arg2[%c3_14, %c0_15] : memref<9x256xf32, #tpu.memory_space<vmem>>, vector<1x256xf32>
    %52 = vector.broadcast %51 : vector<1x256xf32> to vector<2x256xf32>
    %53 = arith.mulf %50, %52 : vector<2x256xf32>
    %c0_16 = arith.constant 0 : index
    %c6 = arith.constant 6 : index
    %54 = vector.load %arg3[%c0_16, %c6] : memref<32x18xf32, #tpu.memory_space<vmem>>, vector<32x1xf32>
    %55 = vector.extract_strided_slice %53 {offsets = [0, 0], sizes = [1, 256], strides = [1, 1]} : vector<2x256xf32> to vector<1x256xf32>
    %56 = vector.broadcast %54 : vector<32x1xf32> to vector<32x256xf32>
    %57 = vector.broadcast %55 : vector<1x256xf32> to vector<32x256xf32>
    %58 = arith.mulf %56, %57 : vector<32x256xf32>
    %59 = arith.addf %49, %58 : vector<32x256xf32>
    %c0_17 = arith.constant 0 : index
    %c7 = arith.constant 7 : index
    %60 = vector.load %arg3[%c0_17, %c7] : memref<32x18xf32, #tpu.memory_space<vmem>>, vector<32x1xf32>
    %61 = vector.extract_strided_slice %53 {offsets = [1, 0], sizes = [1, 256], strides = [1, 1]} : vector<2x256xf32> to vector<1x256xf32>
    %62 = vector.broadcast %60 : vector<32x1xf32> to vector<32x256xf32>
    %63 = vector.broadcast %61 : vector<1x256xf32> to vector<32x256xf32>
    %64 = arith.mulf %62, %63 : vector<32x256xf32>
    %65 = arith.addf %59, %64 : vector<32x256xf32>
    %c0_18 = arith.constant 0 : index
    %c8 = arith.constant 8 : index
    %66 = vector.load %arg3[%c0_18, %c8] : memref<32x18xf32, #tpu.memory_space<vmem>>, vector<32x1xf32>
    %67 = vector.extract_strided_slice %0 {offsets = [0, 0], sizes = [1, 256], strides = [1, 1]} : vector<2x256xf32> to vector<1x256xf32>
    %68 = vector.broadcast %66 : vector<32x1xf32> to vector<32x256xf32>
    %69 = vector.broadcast %67 : vector<1x256xf32> to vector<32x256xf32>
    %70 = arith.mulf %68, %69 : vector<32x256xf32>
    %71 = arith.addf %65, %70 : vector<32x256xf32>
    %c0_19 = arith.constant 0 : index
    %c9 = arith.constant 9 : index
    %72 = vector.load %arg3[%c0_19, %c9] : memref<32x18xf32, #tpu.memory_space<vmem>>, vector<32x1xf32>
    %73 = vector.extract_strided_slice %0 {offsets = [1, 0], sizes = [1, 256], strides = [1, 1]} : vector<2x256xf32> to vector<1x256xf32>
    %74 = vector.broadcast %72 : vector<32x1xf32> to vector<32x256xf32>
    %75 = vector.broadcast %73 : vector<1x256xf32> to vector<32x256xf32>
    %76 = arith.mulf %74, %75 : vector<32x256xf32>
    %77 = arith.addf %71, %76 : vector<32x256xf32>
    %c255_i32 = arith.constant 255 : i32
    %78 = tpu.dynamic_rotate %0 by %c255_i32 dim 1 : vector<2x256xf32>, i32 -> vector<2x256xf32>
    %c5_20 = arith.constant 5 : index
    %c0_21 = arith.constant 0 : index
    %79 = vector.load %arg2[%c5_20, %c0_21] : memref<9x256xf32, #tpu.memory_space<vmem>>, vector<1x256xf32>
    %80 = vector.broadcast %79 : vector<1x256xf32> to vector<2x256xf32>
    %81 = arith.mulf %78, %80 : vector<2x256xf32>
    %c0_22 = arith.constant 0 : index
    %c10 = arith.constant 10 : index
    %82 = vector.load %arg3[%c0_22, %c10] : memref<32x18xf32, #tpu.memory_space<vmem>>, vector<32x1xf32>
    %83 = vector.extract_strided_slice %81 {offsets = [0, 0], sizes = [1, 256], strides = [1, 1]} : vector<2x256xf32> to vector<1x256xf32>
    %84 = vector.broadcast %82 : vector<32x1xf32> to vector<32x256xf32>
    %85 = vector.broadcast %83 : vector<1x256xf32> to vector<32x256xf32>
    %86 = arith.mulf %84, %85 : vector<32x256xf32>
    %87 = arith.addf %77, %86 : vector<32x256xf32>
    %c0_23 = arith.constant 0 : index
    %c11 = arith.constant 11 : index
    %88 = vector.load %arg3[%c0_23, %c11] : memref<32x18xf32, #tpu.memory_space<vmem>>, vector<32x1xf32>
    %89 = vector.extract_strided_slice %81 {offsets = [1, 0], sizes = [1, 256], strides = [1, 1]} : vector<2x256xf32> to vector<1x256xf32>
    %90 = vector.broadcast %88 : vector<32x1xf32> to vector<32x256xf32>
    %91 = vector.broadcast %89 : vector<1x256xf32> to vector<32x256xf32>
    %92 = arith.mulf %90, %91 : vector<32x256xf32>
    %93 = arith.addf %87, %92 : vector<32x256xf32>
    %c241_i32 = arith.constant 241 : i32
    %94 = tpu.dynamic_rotate %0 by %c241_i32 dim 1 : vector<2x256xf32>, i32 -> vector<2x256xf32>
    %c6_24 = arith.constant 6 : index
    %c0_25 = arith.constant 0 : index
    %95 = vector.load %arg2[%c6_24, %c0_25] : memref<9x256xf32, #tpu.memory_space<vmem>>, vector<1x256xf32>
    %96 = vector.broadcast %95 : vector<1x256xf32> to vector<2x256xf32>
    %97 = arith.mulf %94, %96 : vector<2x256xf32>
    %c0_26 = arith.constant 0 : index
    %c12 = arith.constant 12 : index
    %98 = vector.load %arg3[%c0_26, %c12] : memref<32x18xf32, #tpu.memory_space<vmem>>, vector<32x1xf32>
    %99 = vector.extract_strided_slice %97 {offsets = [0, 0], sizes = [1, 256], strides = [1, 1]} : vector<2x256xf32> to vector<1x256xf32>
    %100 = vector.broadcast %98 : vector<32x1xf32> to vector<32x256xf32>
    %101 = vector.broadcast %99 : vector<1x256xf32> to vector<32x256xf32>
    %102 = arith.mulf %100, %101 : vector<32x256xf32>
    %103 = arith.addf %93, %102 : vector<32x256xf32>
    %c0_27 = arith.constant 0 : index
    %c13 = arith.constant 13 : index
    %104 = vector.load %arg3[%c0_27, %c13] : memref<32x18xf32, #tpu.memory_space<vmem>>, vector<32x1xf32>
    %105 = vector.extract_strided_slice %97 {offsets = [1, 0], sizes = [1, 256], strides = [1, 1]} : vector<2x256xf32> to vector<1x256xf32>
    %106 = vector.broadcast %104 : vector<32x1xf32> to vector<32x256xf32>
    %107 = vector.broadcast %105 : vector<1x256xf32> to vector<32x256xf32>
    %108 = arith.mulf %106, %107 : vector<32x256xf32>
    %109 = arith.addf %103, %108 : vector<32x256xf32>
    %c240_i32 = arith.constant 240 : i32
    %110 = tpu.dynamic_rotate %0 by %c240_i32 dim 1 : vector<2x256xf32>, i32 -> vector<2x256xf32>
    %c7_28 = arith.constant 7 : index
    %c0_29 = arith.constant 0 : index
    %111 = vector.load %arg2[%c7_28, %c0_29] : memref<9x256xf32, #tpu.memory_space<vmem>>, vector<1x256xf32>
    %112 = vector.broadcast %111 : vector<1x256xf32> to vector<2x256xf32>
    %113 = arith.mulf %110, %112 : vector<2x256xf32>
    %c0_30 = arith.constant 0 : index
    %c14 = arith.constant 14 : index
    %114 = vector.load %arg3[%c0_30, %c14] : memref<32x18xf32, #tpu.memory_space<vmem>>, vector<32x1xf32>
    %115 = vector.extract_strided_slice %113 {offsets = [0, 0], sizes = [1, 256], strides = [1, 1]} : vector<2x256xf32> to vector<1x256xf32>
    %116 = vector.broadcast %114 : vector<32x1xf32> to vector<32x256xf32>
    %117 = vector.broadcast %115 : vector<1x256xf32> to vector<32x256xf32>
    %118 = arith.mulf %116, %117 : vector<32x256xf32>
    %119 = arith.addf %109, %118 : vector<32x256xf32>
    %c0_31 = arith.constant 0 : index
    %c15 = arith.constant 15 : index
    %120 = vector.load %arg3[%c0_31, %c15] : memref<32x18xf32, #tpu.memory_space<vmem>>, vector<32x1xf32>
    %121 = vector.extract_strided_slice %113 {offsets = [1, 0], sizes = [1, 256], strides = [1, 1]} : vector<2x256xf32> to vector<1x256xf32>
    %122 = vector.broadcast %120 : vector<32x1xf32> to vector<32x256xf32>
    %123 = vector.broadcast %121 : vector<1x256xf32> to vector<32x256xf32>
    %124 = arith.mulf %122, %123 : vector<32x256xf32>
    %125 = arith.addf %119, %124 : vector<32x256xf32>
    %c239_i32 = arith.constant 239 : i32
    %126 = tpu.dynamic_rotate %0 by %c239_i32 dim 1 : vector<2x256xf32>, i32 -> vector<2x256xf32>
    %c8_32 = arith.constant 8 : index
    %c0_33 = arith.constant 0 : index
    %127 = vector.load %arg2[%c8_32, %c0_33] : memref<9x256xf32, #tpu.memory_space<vmem>>, vector<1x256xf32>
    %128 = vector.broadcast %127 : vector<1x256xf32> to vector<2x256xf32>
    %129 = arith.mulf %126, %128 : vector<2x256xf32>
    %c0_34 = arith.constant 0 : index
    %c16 = arith.constant 16 : index
    %130 = vector.load %arg3[%c0_34, %c16] : memref<32x18xf32, #tpu.memory_space<vmem>>, vector<32x1xf32>
    %131 = vector.extract_strided_slice %129 {offsets = [0, 0], sizes = [1, 256], strides = [1, 1]} : vector<2x256xf32> to vector<1x256xf32>
    %132 = vector.broadcast %130 : vector<32x1xf32> to vector<32x256xf32>
    %133 = vector.broadcast %131 : vector<1x256xf32> to vector<32x256xf32>
    %134 = arith.mulf %132, %133 : vector<32x256xf32>
    %135 = arith.addf %125, %134 : vector<32x256xf32>
    %c0_35 = arith.constant 0 : index
    %c17 = arith.constant 17 : index
    %136 = vector.load %arg3[%c0_35, %c17] : memref<32x18xf32, #tpu.memory_space<vmem>>, vector<32x1xf32>
    %137 = vector.extract_strided_slice %129 {offsets = [1, 0], sizes = [1, 256], strides = [1, 1]} : vector<2x256xf32> to vector<1x256xf32>
    %138 = vector.broadcast %136 : vector<32x1xf32> to vector<32x256xf32>
    %139 = vector.broadcast %137 : vector<1x256xf32> to vector<32x256xf32>
    %140 = arith.mulf %138, %139 : vector<32x256xf32>
    %141 = arith.addf %135, %140 : vector<32x256xf32>
    %c0_36 = arith.constant 0 : index
    %c0_37 = arith.constant 0 : index
    %142 = vector.load %arg4[%c0_36, %c0_37] : memref<32x1xf32, #tpu.memory_space<vmem>>, vector<32x1xf32>
    %143 = vector.broadcast %142 : vector<32x1xf32> to vector<32x256xf32>
    %144 = arith.addf %141, %143 : vector<32x256xf32>
    %cst_38 = arith.constant 0.000000e+00 : f32
    %145 = vector.broadcast %cst_38 : f32 to vector<32x256xf32>
    %146 = arith.maximumf %144, %145 : vector<32x256xf32>
    %cst_39 = arith.constant 0.000000e+00 : f32
    %147 = vector.broadcast %cst_39 : f32 to vector<2x256xf32>
    %c17_i32_40 = arith.constant 17 : i32
    %148 = tpu.dynamic_rotate %146 by %c17_i32_40 dim 1 : vector<32x256xf32>, i32 -> vector<32x256xf32>
    %c0_41 = arith.constant 0 : index
    %c0_42 = arith.constant 0 : index
    %149 = vector.load %arg2[%c0_41, %c0_42] : memref<9x256xf32, #tpu.memory_space<vmem>>, vector<1x256xf32>
    %150 = vector.broadcast %149 : vector<1x256xf32> to vector<32x256xf32>
    %151 = arith.mulf %148, %150 : vector<32x256xf32>
    %c0_43 = arith.constant 0 : index
    %c0_44 = arith.constant 0 : index
    %152 = vector.load %arg5[%c0_43, %c0_44] : memref<2x288xf32, #tpu.memory_space<vmem>>, vector<2x32xf32>
    %cst_45 = arith.constant dense<0.000000e+00> : vector<2x256xf32>
    %153 = tpu.matmul %152, %151, %cst_45 {dimension_numbers = #tpu.dot_dimension_numbers<[1], [0], [0], [1], [0, 0, 1, 1], [], []>} : vector<2x32xf32>, vector<32x256xf32>, vector<2x256xf32> -> vector<2x256xf32>
    %154 = arith.addf %147, %153 : vector<2x256xf32>
    %c16_i32_46 = arith.constant 16 : i32
    %155 = tpu.dynamic_rotate %146 by %c16_i32_46 dim 1 : vector<32x256xf32>, i32 -> vector<32x256xf32>
    %c1_47 = arith.constant 1 : index
    %c0_48 = arith.constant 0 : index
    %156 = vector.load %arg2[%c1_47, %c0_48] : memref<9x256xf32, #tpu.memory_space<vmem>>, vector<1x256xf32>
    %157 = vector.broadcast %156 : vector<1x256xf32> to vector<32x256xf32>
    %158 = arith.mulf %155, %157 : vector<32x256xf32>
    %c0_49 = arith.constant 0 : index
    %c32 = arith.constant 32 : index
    %159 = vector.load %arg5[%c0_49, %c32] : memref<2x288xf32, #tpu.memory_space<vmem>>, vector<2x32xf32>
    %cst_50 = arith.constant dense<0.000000e+00> : vector<2x256xf32>
    %160 = tpu.matmul %159, %158, %cst_50 {dimension_numbers = #tpu.dot_dimension_numbers<[1], [0], [0], [1], [0, 0, 1, 1], [], []>} : vector<2x32xf32>, vector<32x256xf32>, vector<2x256xf32> -> vector<2x256xf32>
    %161 = arith.addf %154, %160 : vector<2x256xf32>
    %c15_i32_51 = arith.constant 15 : i32
    %162 = tpu.dynamic_rotate %146 by %c15_i32_51 dim 1 : vector<32x256xf32>, i32 -> vector<32x256xf32>
    %c2_52 = arith.constant 2 : index
    %c0_53 = arith.constant 0 : index
    %163 = vector.load %arg2[%c2_52, %c0_53] : memref<9x256xf32, #tpu.memory_space<vmem>>, vector<1x256xf32>
    %164 = vector.broadcast %163 : vector<1x256xf32> to vector<32x256xf32>
    %165 = arith.mulf %162, %164 : vector<32x256xf32>
    %c0_54 = arith.constant 0 : index
    %c64 = arith.constant 64 : index
    %166 = vector.load %arg5[%c0_54, %c64] : memref<2x288xf32, #tpu.memory_space<vmem>>, vector<2x32xf32>
    %cst_55 = arith.constant dense<0.000000e+00> : vector<2x256xf32>
    %167 = tpu.matmul %166, %165, %cst_55 {dimension_numbers = #tpu.dot_dimension_numbers<[1], [0], [0], [1], [0, 0, 1, 1], [], []>} : vector<2x32xf32>, vector<32x256xf32>, vector<2x256xf32> -> vector<2x256xf32>
    %168 = arith.addf %161, %167 : vector<2x256xf32>
    %c1_i32_56 = arith.constant 1 : i32
    %169 = tpu.dynamic_rotate %146 by %c1_i32_56 dim 1 : vector<32x256xf32>, i32 -> vector<32x256xf32>
    %c3_57 = arith.constant 3 : index
    %c0_58 = arith.constant 0 : index
    %170 = vector.load %arg2[%c3_57, %c0_58] : memref<9x256xf32, #tpu.memory_space<vmem>>, vector<1x256xf32>
    %171 = vector.broadcast %170 : vector<1x256xf32> to vector<32x256xf32>
    %172 = arith.mulf %169, %171 : vector<32x256xf32>
    %c0_59 = arith.constant 0 : index
    %c96 = arith.constant 96 : index
    %173 = vector.load %arg5[%c0_59, %c96] : memref<2x288xf32, #tpu.memory_space<vmem>>, vector<2x32xf32>
    %cst_60 = arith.constant dense<0.000000e+00> : vector<2x256xf32>
    %174 = tpu.matmul %173, %172, %cst_60 {dimension_numbers = #tpu.dot_dimension_numbers<[1], [0], [0], [1], [0, 0, 1, 1], [], []>} : vector<2x32xf32>, vector<32x256xf32>, vector<2x256xf32> -> vector<2x256xf32>
    %175 = arith.addf %168, %174 : vector<2x256xf32>
    %c0_61 = arith.constant 0 : index
    %c128 = arith.constant 128 : index
    %176 = vector.load %arg5[%c0_61, %c128] : memref<2x288xf32, #tpu.memory_space<vmem>>, vector<2x32xf32>
    %cst_62 = arith.constant dense<0.000000e+00> : vector<2x256xf32>
    %177 = tpu.matmul %176, %146, %cst_62 {dimension_numbers = #tpu.dot_dimension_numbers<[1], [0], [0], [1], [0, 0, 1, 1], [], []>} : vector<2x32xf32>, vector<32x256xf32>, vector<2x256xf32> -> vector<2x256xf32>
    %178 = arith.addf %175, %177 : vector<2x256xf32>
    %c255_i32_63 = arith.constant 255 : i32
    %179 = tpu.dynamic_rotate %146 by %c255_i32_63 dim 1 : vector<32x256xf32>, i32 -> vector<32x256xf32>
    %c5_64 = arith.constant 5 : index
    %c0_65 = arith.constant 0 : index
    %180 = vector.load %arg2[%c5_64, %c0_65] : memref<9x256xf32, #tpu.memory_space<vmem>>, vector<1x256xf32>
    %181 = vector.broadcast %180 : vector<1x256xf32> to vector<32x256xf32>
    %182 = arith.mulf %179, %181 : vector<32x256xf32>
    %c0_66 = arith.constant 0 : index
    %c160 = arith.constant 160 : index
    %183 = vector.load %arg5[%c0_66, %c160] : memref<2x288xf32, #tpu.memory_space<vmem>>, vector<2x32xf32>
    %cst_67 = arith.constant dense<0.000000e+00> : vector<2x256xf32>
    %184 = tpu.matmul %183, %182, %cst_67 {dimension_numbers = #tpu.dot_dimension_numbers<[1], [0], [0], [1], [0, 0, 1, 1], [], []>} : vector<2x32xf32>, vector<32x256xf32>, vector<2x256xf32> -> vector<2x256xf32>
    %185 = arith.addf %178, %184 : vector<2x256xf32>
    %c241_i32_68 = arith.constant 241 : i32
    %186 = tpu.dynamic_rotate %146 by %c241_i32_68 dim 1 : vector<32x256xf32>, i32 -> vector<32x256xf32>
    %c6_69 = arith.constant 6 : index
    %c0_70 = arith.constant 0 : index
    %187 = vector.load %arg2[%c6_69, %c0_70] : memref<9x256xf32, #tpu.memory_space<vmem>>, vector<1x256xf32>
    %188 = vector.broadcast %187 : vector<1x256xf32> to vector<32x256xf32>
    %189 = arith.mulf %186, %188 : vector<32x256xf32>
    %c0_71 = arith.constant 0 : index
    %c192 = arith.constant 192 : index
    %190 = vector.load %arg5[%c0_71, %c192] : memref<2x288xf32, #tpu.memory_space<vmem>>, vector<2x32xf32>
    %cst_72 = arith.constant dense<0.000000e+00> : vector<2x256xf32>
    %191 = tpu.matmul %190, %189, %cst_72 {dimension_numbers = #tpu.dot_dimension_numbers<[1], [0], [0], [1], [0, 0, 1, 1], [], []>} : vector<2x32xf32>, vector<32x256xf32>, vector<2x256xf32> -> vector<2x256xf32>
    %192 = arith.addf %185, %191 : vector<2x256xf32>
    %c240_i32_73 = arith.constant 240 : i32
    %193 = tpu.dynamic_rotate %146 by %c240_i32_73 dim 1 : vector<32x256xf32>, i32 -> vector<32x256xf32>
    %c7_74 = arith.constant 7 : index
    %c0_75 = arith.constant 0 : index
    %194 = vector.load %arg2[%c7_74, %c0_75] : memref<9x256xf32, #tpu.memory_space<vmem>>, vector<1x256xf32>
    %195 = vector.broadcast %194 : vector<1x256xf32> to vector<32x256xf32>
    %196 = arith.mulf %193, %195 : vector<32x256xf32>
    %c0_76 = arith.constant 0 : index
    %c224 = arith.constant 224 : index
    %197 = vector.load %arg5[%c0_76, %c224] : memref<2x288xf32, #tpu.memory_space<vmem>>, vector<2x32xf32>
    %cst_77 = arith.constant dense<0.000000e+00> : vector<2x256xf32>
    %198 = tpu.matmul %197, %196, %cst_77 {dimension_numbers = #tpu.dot_dimension_numbers<[1], [0], [0], [1], [0, 0, 1, 1], [], []>} : vector<2x32xf32>, vector<32x256xf32>, vector<2x256xf32> -> vector<2x256xf32>
    %199 = arith.addf %192, %198 : vector<2x256xf32>
    %c239_i32_78 = arith.constant 239 : i32
    %200 = tpu.dynamic_rotate %146 by %c239_i32_78 dim 1 : vector<32x256xf32>, i32 -> vector<32x256xf32>
    %c8_79 = arith.constant 8 : index
    %c0_80 = arith.constant 0 : index
    %201 = vector.load %arg2[%c8_79, %c0_80] : memref<9x256xf32, #tpu.memory_space<vmem>>, vector<1x256xf32>
    %202 = vector.broadcast %201 : vector<1x256xf32> to vector<32x256xf32>
    %203 = arith.mulf %200, %202 : vector<32x256xf32>
    %c0_81 = arith.constant 0 : index
    %c256 = arith.constant 256 : index
    %204 = vector.load %arg5[%c0_81, %c256] : memref<2x288xf32, #tpu.memory_space<vmem>>, vector<2x32xf32>
    %cst_82 = arith.constant dense<0.000000e+00> : vector<2x256xf32>
    %205 = tpu.matmul %204, %203, %cst_82 {dimension_numbers = #tpu.dot_dimension_numbers<[1], [0], [0], [1], [0, 0, 1, 1], [], []>} : vector<2x32xf32>, vector<32x256xf32>, vector<2x256xf32> -> vector<2x256xf32>
    %206 = arith.addf %199, %205 : vector<2x256xf32>
    %c0_83 = arith.constant 0 : index
    %c0_84 = arith.constant 0 : index
    %207 = vector.load %arg6[%c0_83, %c0_84] : memref<2x1xf32, #tpu.memory_space<vmem>>, vector<2x1xf32>
    %208 = vector.broadcast %207 : vector<2x1xf32> to vector<2x256xf32>
    %209 = arith.addf %206, %208 : vector<2x256xf32>
    %c0_85 = arith.constant 0 : index
    %c0_86 = arith.constant 0 : index
    %210 = vector.load %arg7[%c0_85, %c0_86] : memref<2x256xf32, #tpu.memory_space<vmem>>, vector<2x256xf32>
    tpu.vector_store %arg7[%c0_85, %c0_86], %209 {strides = array<i32>} : memref<2x256xf32, #tpu.memory_space<vmem>>, vector<2x256xf32>,
    return
  }
  func.func @transform_0(%arg0: i32) -> (i32, i32) {
    %c0_i32 = arith.constant 0 : i32
    %c0_i32_0 = arith.constant 0 : i32
    return %c0_i32, %arg0 : i32, i32
  }
  func.func @transform_1(%arg0: i32) -> (i32, i32) {
    %c0_i32 = arith.constant 0 : i32
    %c0_i32_0 = arith.constant 0 : i32
    %c0_i32_1 = arith.constant 0 : i32
    return %c0_i32, %c0_i32_0 : i32, i32
  }
  func.func @transform_2(%arg0: i32) -> (i32, i32) {
    %c0_i32 = arith.constant 0 : i32
    %c0_i32_0 = arith.constant 0 : i32
    %c0_i32_1 = arith.constant 0 : i32
    return %c0_i32, %c0_i32_0 : i32, i32
  }
  func.func @transform_3(%arg0: i32) -> (i32, i32) {
    %c0_i32 = arith.constant 0 : i32
    %c0_i32_0 = arith.constant 0 : i32
    %c0_i32_1 = arith.constant 0 : i32
    return %c0_i32, %c0_i32_0 : i32, i32
  }
  func.func @transform_4(%arg0: i32) -> (i32, i32) {
    %c0_i32 = arith.constant 0 : i32
    %c0_i32_0 = arith.constant 0 : i32
    %c0_i32_1 = arith.constant 0 : i32
    return %c0_i32, %c0_i32_0 : i32, i32
  }
  func.func @transform_5(%arg0: i32) -> (i32, i32) {
    %c0_i32 = arith.constant 0 : i32
    %c0_i32_0 = arith.constant 0 : i32
    %c0_i32_1 = arith.constant 0 : i32
    return %c0_i32, %c0_i32_0 : i32, i32
  }
  func.func @transform_6(%arg0: i32) -> (i32, i32) {
    %c0_i32 = arith.constant 0 : i32
    %c0_i32_0 = arith.constant 0 : i32
    return %c0_i32, %arg0 : i32, i32
  }
}

</mosaic_0001>

<bundles_post_ra>
// kernel: tpu_custom_call.1
= control target key start
LH: loop header
LB: loop body
LE: loop exit
PB: predicated region body
PF: predicated region fallthrough
CT: control target
= control target key end

     0   :  { %11 = vsyncpa [#allocation3], 0  ;;  %s3264_s0 = inlined_call_operand.vmem [shape: f32[2,512], index: 0, kind: input, shape index: {}]   ;;  %s3265_s1 = inlined_call_operand.vmem [shape: f32[9,256], index: 1, kind: input, shape index: {}]   ;;  %s3266_s2 = inlined_call_operand.vmem [shape: f32[32,18], index: 2, kind: input, shape index: {}]   ;;  %s3267_s3 = inlined_call_operand.vmem [shape: f32[32,1], index: 3, kind: input, shape index: {}]   ;;  %s3268_s4 = inlined_call_operand.vmem [shape: f32[2,288], index: 4, kind: input, shape index: {}]   ;;  %s3269_s5 = inlined_call_operand.vmem [shape: f32[2,1], index: 5, kind: input, shape index: {}]   ;;  %s3270_s6 = inlined_call_operand.hbm [shape: f32[2,512], index: 6, kind: output, shape index: {}]  }
   0x1   :  { %13 = vsyncpa [#allocation3 + $0x1], 0  ;;  %s2215_s21 = smov 0   ;;  %s2217_s22 = smov 0  }
   0x2   :  { %s2219_s23 = smov 0   ;;  %s2221_s24 = smov 0  }
   0x3 LB: > { %s2236_s25 = sadd.s32 4294967295, %s2149_s24   ;;  %s1926_s26 = sadd.s32 4294967294, %s2149_s24   ;;  %s2149_s24 = sphi %s2221_s24, %s3276_s24   ;;  %s2145_s23 = sphi %s2219_s23, %s3275_s23   ;;  %s2141_s22 = sphi %s2217_s22, %s3274_s22   ;;  %s2137_s21 = sphi %s2215_s21, %s3273_s21  }
   0x4   : > { %s2240_s27 = sadd.s32 1, %s2149_s24   ;;  %s157_s28 = sadd.s32 1, %s2145_s23 }
   0x5   : > { %s154_s29 = ssub.s32 %s2149_s24, %s2240_s27  ;;  %p167_p0 = scmp.ne.s32.totalorder %s2145_s23, %s2141_s22 }
   0x6   : > { %p155_p1 = scmp.eq.s32.totalorder %s154_s29, 0  ;;  %p168_p2 = scmp.eq.s32.totalorder %s2236_s25, 1 }
   0x7   : > { %p173_p3 = scmp.ne.s32.totalorder %s2141_s22, %s2137_s21  ;;  %p174_p4 = scmp.eq.s32.totalorder %s1926_s26, 1 }
   0x8   : > { %s2251_s30 = scalar_select %p155_p1, %s2145_s23, %s157_s28  }
   0x9   : > { %p2253_p5 = por %p168_p2, %p167_p0  ;;  %p2257_p6 = por %p174_p4, %p173_p3 }
   0xa   : > { %p1929_p7 = scmp.ge.s32.totalorder %s2149_s24, 1  ;;  %p216_p8 = scmp.lt.s32.totalorder %s2149_s24, 3 }
   0xc   : > { %p217_p9 = pnand %p1929_p7, %p216_p8 }
   0xd   : > { %s1931_s13 = sshll.u32 (!%p217_p9), %s2236_s25, 1  ;;  %s2153_s28 = smov (!%p217_p9), 17  }
   0xe   : > { %220 = sbr.rel (%p217_p9) target bundleno = 859 (0x35b), region = 44  ;;  %p247_p10 = scmp.lt.s32.totalorder (!%p217_p9), %s1931_s13, 3 }
   0xf   : > { %s2154_s29 = smov (!%p217_p9), 16   ;;  %s2157_s9 = smov (!%p217_p9), 15  }
  0x10   : > { %s2162_s10 = smov (!%p217_p9), 1   ;;  %s2164_s11 = smov (!%p217_p9), 127  }
  0x11   : > { %s2170_s18 = smov (!%p217_p9), 113   ;;  %s2173_s26 = smov (!%p217_p9), 112  }
  0x12   : > { %s2179_s15 = smov (!%p217_p9), 32   ;;  %s1963_s20 = sshll.u32 (!%p217_p9), %s2236_s25, 2 }
  0x13   : > { %v2266_v0 = vld [vmem:[%s3266_s2 + $0x10] sm:$0xff]  ;;  %v2271_v1 = vld [vmem:[%s3266_s2] sm:$0xff]  ;;  %v2151_v2 = vmov 0   ;;  %s3278_s13 = smov (!%p247_p10, %s1931_s13), 3  ;;  %v2152_v3 = vmov 1   ;;  %v2284_v4 = vld [vmem:[%s3266_s2 + $0x18] sm:$0xff]  ;;  %v264_v33 = vlaneseq }
  0x14   : > { %2033 = vset.pattern.permute.xlu2 %v2151_v2  ;;  %2032 = vset.pattern.permute.xlu1 %v2151_v2  ;;  %s1932_s14 = sshll.u32 %s3278_s13, 1  ;;  %v2289_v5 = vld [vmem:[%s3266_s2 + $0x8] sm:$0xff]  ;;  %v2155_v11 = vmov 2   ;;  %v2156_v14 = vmov 3   ;;  %v2158_v15 = vmov 4   ;;  %v2159_v18 = vmov 5  }
  0x15   : > { %293 = vperm.xlu2 %2033, %v2266_v0   ;;  %283 = vperm.xlu1 %2032, %v2271_v1   ;;  %s250_s17 = scalar_lea.vmem %s3264_s0, %s1932_s14  ;;  %v2160_v19 = vmov 6   ;;  %v2161_v21 = vmov 7   ;;  %v2163_v23 = vmov 9   ;;  %v2165_v26 = vmov 10   ;;  %s2176_s14 = smov 111  }
  0x16   : > { %2034 = vset.pattern.permute.xlu0 %v2152_v3  ;;  %v2291_v6 = vld [vmem:[%s250_s17] sm:$0xf]  ;;  %v2166_v32 = vmov 8   ;;  %v2167_v34 = vmov 11   ;;  %v2357_v36 = vand.u32 127, %v264_v33  ;;  %vm1218_vm8 = vcmask 261120  }
  0x17   : > { %255 = vst [vmem:[#allocation1] ss:$4 sm:$0xff] %v2291_v6  ;;  %v269_v38 = vld [vmem:[%s3265_s1] ss:$8 sm:$0x3]  ;;  %vm1846_vm9 = vcmask 1041408  }
  0x18   : > { %vm266_vm0 = vcmp.lt.s32.totalorder %v2357_v36, 17  ;;  %v2369_v40 = vperm.slane %v269_v38, 0  ;;  %v2371_v41 = vperm.slane %v269_v38, 1  ;;  %v1933_v60 = vld [vmem:[%s3265_s1 + $0x1] ss:$8 sm:$0x3] }
  0x19   : > { %vm362_vm1 = vcmp.lt.s32.totalorder %v2357_v36, 16  ;;  %v2402_v63 = vperm.slane %v1933_v60, 1  ;;  %vm459_vm2 = vcmp.lt.s32.totalorder %v2357_v36, 15  ;;  %vm556_vm3 = vcmp.lt.s32.totalorder %v2357_v36, 1 }
  0x1a   : > { %vm729_vm4 = vcmp.lt.s32.totalorder %v2357_v36, 127  ;;  %vm826_vm5 = vcmp.lt.s32.totalorder %v2357_v36, 113  ;;  %vm923_vm6 = vcmp.lt.s32.totalorder %v2357_v36, 112  ;;  %vm1020_vm7 = vcmp.lt.s32.totalorder %v2357_v36, 111 }
  0x1d   : > { %298 = vperm.xlu2 %2033, %v2284_v4   ;;  %288 = vperm.xlu1 %2032, %v2289_v5  }
  0x1e   : > { %v256_v7 = vld.sshfl [vmem:[#allocation1] sm:$0xff pattern:$0x73625140]  ;;  %v257_v8 = vld.sshfl [vmem:[#allocation1 + $0x8] sm:$0xff pattern:$0x73625140] }
  0x1f   : > { %260 = vrot.lane.b32.xlu0 %v256_v7, %s2153_s28  ;;  %353 = vst [vmem:[#allocation1] ss:$4 sm:$0xff] %v2291_v6 }
  0x25   : > { %2036 = vset.pattern.permute.xlu2 %v2152_v3  ;;  %2035 = vset.pattern.permute.xlu1 %v2152_v3  ;;  %v2404_v3 = vperm.slane %v1933_v60, 0 }
  0x26   : > { %328 = vperm.xlu2 %2036, %v2266_v0   ;;  %324 = vperm.xlu1 %2035, %v2289_v5   ;;  %v354_v9 = vld.sshfl [vmem:[#allocation1] sm:$0xff pattern:$0x73625140]  ;;  %v355_v10 = vld.sshfl [vmem:[#allocation1 + $0x8] sm:$0xff pattern:$0x73625140] }
  0x27   : > { %262 = vrot.lane.b32.xlu0 %v257_v8, %s2153_s28  ;;  %450 = vst [vmem:[#allocation1] ss:$4 sm:$0xff] %v2291_v6 }
  0x2e   : > { %332 = vperm.xlu1 %2035, %v2284_v4   ;;  %358 = vrot.lane.b32.xlu2 %v354_v9, %s2154_s29  ;;  %v452_v12 = vld.sshfl [vmem:[#allocation1 + $0x8] sm:$0xff pattern:$0x73625140]  ;;  %v451_v13 = vld.sshfl [vmem:[#allocation1] sm:$0xff pattern:$0x73625140] }
  0x2f   : > { %2038 = vset.pattern.permute.xlu2 %v2155_v11  ;;  %320 = vperm.xlu0 %2034, %v2271_v1   ;;  %547 = vst [vmem:[#allocation1] ss:$4 sm:$0xff] %v2291_v6  ;;  %v2168_v9 = vmov 12  }
  0x36   : > { %2037 = vset.pattern.permute.xlu1 %v2155_v11  ;;  %385 = vperm.xlu2 %2038, %v2289_v5   ;;  %v549_v16 = vld.sshfl [vmem:[#allocation1 + $0x8] sm:$0xff pattern:$0x73625140]  ;;  %v548_v17 = vld.sshfl [vmem:[#allocation1] sm:$0xff pattern:$0x73625140] }
  0x37   : > { %380 = vperm.xlu1 %2037, %v2271_v1   ;;  %360 = vrot.lane.b32.xlu0 %v355_v10, %s2154_s29  ;;  %720 = vst [vmem:[#allocation1] ss:$4 sm:$0xff] %v2291_v6 }
  0x38   : > { %2039 = vset.pattern.permute.xlu0 %v2155_v11 }
  0x3e   : > { %2040 = vset.pattern.permute.xlu2 %v2156_v14  ;;  %v722_v24 = vld.sshfl [vmem:[#allocation1 + $0x8] sm:$0xff pattern:$0x73625140]  ;;  %v721_v29 = vld.sshfl [vmem:[#allocation1] sm:$0xff pattern:$0x73625140] }
  0x3f   : > { %395 = vperm.xlu1 %2037, %v2284_v4   ;;  %417 = vperm.xlu2 %2040, %v2271_v1   ;;  %817 = vst [vmem:[#allocation1] ss:$4 sm:$0xff] %v2291_v6 }
  0x40   : > { %390 = vperm.xlu0 %2039, %v2266_v0  }
  0x46   : > { %v2410_v10 = vld.sshfl [vmem:[#allocation1 + $0x8] sm:$0xff pattern:$0x73625140]  ;;  %v2412_v11 = vld.sshfl [vmem:[#allocation1] sm:$0xff pattern:$0x73625140] }
  0x47   : > { %2041 = vset.pattern.permute.xlu1 %v2156_v14  ;;  %425 = vperm.xlu2 %2040, %v2266_v0   ;;  %914 = vst [vmem:[#allocation1] ss:$4 sm:$0xff] %v2291_v6 }
  0x48   : > { %421 = vperm.xlu1 %2041, %v2289_v5   ;;  %2042 = vset.pattern.permute.xlu0 %v2156_v14 }
  0x49   : > { %429 = vperm.xlu0 %2042, %v2284_v4  }
  0x4f   : > { %457 = vrot.lane.b32.xlu2 %v452_v12, %s2157_s9 }
  0x50   : > { %455 = vrot.lane.b32.xlu1 %v451_v13, %s2157_s9  ;;  %2044 = vset.pattern.permute.xlu2 %v2158_v15 }
  0x51   : > { %2043 = vset.pattern.permute.xlu1 %v2158_v15  ;;  %2045 = vset.pattern.permute.xlu0 %v2158_v15 }
  0x52   : > { %487 = vperm.xlu0 %2045, %v2266_v0  }
  0x57   : > { %482 = vperm.xlu2 %2044, %v2289_v5  }
  0x58   : > { %477 = vperm.xlu1 %2043, %v2271_v1  }
  0x5a   : > { %2048 = vset.pattern.permute.xlu0 %v2159_v18 }
  0x5b   : > { %526 = vperm.xlu0 %2048, %v2284_v4  }
  0x5f   : > { %2046 = vset.pattern.permute.xlu2 %v2159_v18 }
  0x60   : > { %514 = vperm.xlu2 %2046, %v2271_v1   ;;  %492 = vperm.xlu1 %2043, %v2284_v4  }
  0x63   : > { %2051 = vset.pattern.permute.xlu0 %v2160_v19 }
  0x64   : > { %584 = vperm.xlu0 %2051, %v2266_v0  }
  0x68   : > { %522 = vperm.xlu2 %2046, %v2266_v0   ;;  %2047 = vset.pattern.permute.xlu1 %v2159_v18 }
  0x69   : > { %518 = vperm.xlu1 %2047, %v2289_v5  }
  0x6c   : > { %2054 = vset.pattern.permute.xlu0 %v2161_v21 }
  0x6d   : > { %623 = vperm.xlu0 %2054, %v2284_v4  }
  0x6f   : > { %v2327_v20 = vpop.permute.xlu2 %293 }
  0x70   : > { %554 = vrot.lane.b32.xlu2 %v549_v16, %s2162_s10 }
  0x71   : > { %552 = vrot.lane.b32.xlu1 %v548_v17, %s2162_s10  ;;  %2050 = vset.pattern.permute.xlu2 %v2160_v19 }
  0x72   : > { %2049 = vset.pattern.permute.xlu1 %v2160_v19 }
  0x75   : > { %2057 = vset.pattern.permute.xlu0 %v2163_v23 }
  0x76   : > { %683 = vperm.xlu0 %2057, %v2271_v1  }
  0x77   : > { %v2333_v22 = vpop.permute.xlu2 %298 }
  0x78   : > { %579 = vperm.xlu2 %2050, %v2289_v5  }
  0x79   : > { %574 = vperm.xlu1 %2049, %v2271_v1  }
  0x7e   : > { %727 = vrot.lane.b32.xlu0 %v722_v24, %s2164_s11 }
  0x7f   : > { %2062 = vset.pattern.permute.xlu0 %v2165_v26 }
  0x80   : > { %2052 = vset.pattern.permute.xlu2 %v2161_v21  ;;  %v2337_v25 = vpop.permute.xlu2 %328 }
  0x81   : > { %611 = vperm.xlu2 %2052, %v2271_v1   ;;  %589 = vperm.xlu1 %2049, %v2284_v4  }
  0x86   : > { %757 = vperm.xlu0 %2062, %v2266_v0  }
  0x87   : > { %v284_v27 = vpop.permute.xlu1 %283 }
  0x88   : > { %v2343_v28 = vpop.permute.xlu2 %358 }
  0x89   : > { %619 = vperm.xlu2 %2052, %v2266_v0   ;;  %2053 = vset.pattern.permute.xlu1 %v2161_v21 }
  0x8a   : > { %615 = vperm.xlu1 %2053, %v2289_v5  }
  0x8e   : > { %2065 = vset.pattern.permute.xlu0 %v2167_v34 }
  0x8f   : > { %v2349_v30 = vpop.permute.xlu1 %288  ;;  %796 = vperm.xlu0 %2065, %v2284_v4  }
  0x90   : > { %v2351_v31 = vpop.permute.xlu2 %385 }
  0x91   : > { %2056 = vset.pattern.permute.xlu2 %v2166_v32  ;;  %v261_v35 = vpop.permute.xlu0 %260 }
  0x92   : > { %649 = vperm.xlu2 %2056, %v2289_v5   ;;  %2055 = vset.pattern.permute.xlu1 %v2166_v32 }
  0x93   : > { %645 = vperm.xlu1 %2055, %v2271_v1  }
  0x97   : > { %2068 = vset.pattern.permute.xlu0 %v2168_v9 }
  0x98   : > { %v2359_v37 = vpop.permute.xlu1 %324  ;;  %854 = vperm.xlu0 %2068, %v2266_v0  }
  0x99   : > { %v2364_v39 = vpop.permute.xlu2 %417  ;;  %v263_v42 = vpop.permute.xlu0 %262 }
  0x9a   : > { %657 = vperm.xlu2 %2056, %v2284_v4   ;;  %v267_v43 = vsel %vm266_vm0, %v261_v35, %v263_v42  ;;  %v268_v44 = vsel %vm266_vm0, %v263_v42, %v261_v35 }
  0x9b   : > { %653 = vperm.xlu1 %2055, %v2266_v0   ;;  %v275_v45 = vmul.f32 %v2369_v40, %v268_v44  ;;  %v276_v46 = vmul.f32 %v2371_v41, %v267_v43 }
  0x9d   : > { %v2383_v49 = vperm.slane %v275_v45, 0  ;;  %v302_v50 = vperm.slane %v276_v46, 0  ;;  %v2386_v51 = vperm.slane %v275_v45, 1  ;;  %v336_v52 = vperm.slane %v276_v46, 1 }
  0x9f   : > { %v303_v54 = vmul.f32 %v2383_v49, %v284_v27  ;;  %v304_v55 = vmul.f32 %v302_v50, %v284_v27  ;;  %v310_v7 = vmul.f32 %v302_v50, %v2333_v22  ;;  %v306_v16 = vmul.f32 %v302_v50, %v2349_v30 }
  0xa0   : > { %v2379_v47 = vpop.permute.xlu1 %332  ;;  %v340_v17 = vmul.f32 %v336_v52, %v2359_v37  ;;  %v341_v24 = vmul.f32 %v2386_v51, %v2337_v25  ;;  %v342_v32 = vmul.f32 %v336_v52, %v2337_v25 }
  0xa1   : > { %v2381_v48 = vpop.permute.xlu2 %425  ;;  %v321_v53 = vpop.permute.xlu0 %320  ;;  %v344_v12 = vmul.f32 %v336_v52, %v2379_v47 }
  0xa2   : > { %2059 = vset.pattern.permute.xlu2 %v2163_v23  ;;  %v337_v56 = vmul.f32 %v2386_v51, %v321_v53  ;;  %v338_v57 = vmul.f32 %v336_v52, %v321_v53  ;;  %v348_v38 = vadd.f32 %v340_v17, %v306_v16 }
  0xa3   : > { %691 = vperm.xlu2 %2059, %v2266_v0   ;;  %2058 = vset.pattern.permute.xlu1 %v2163_v23  ;;  %v307_v23 = vmul.f32 %v2383_v49, %v2327_v20 }
  0xa4   : > { %687 = vperm.xlu1 %2058, %v2289_v5   ;;  %v2391_v58 = vadd.f32 %v337_v56, %v303_v54  ;;  %v346_v59 = vadd.f32 %v338_v57, %v304_v55 }
  0xa5   : > { %v349_v46 = vadd.f32 %v341_v24, %v307_v23 }
  0xa9   : > { %v2396_v61 = vpop.permute.xlu1 %380  ;;  %v2398_v62 = vpop.permute.xlu2 %457 }
  0xaa   : > { %v361_v8 = vpop.permute.xlu0 %360 }
  0xab   : > { %725 = vrot.lane.b32.xlu2 %v721_v29, %s2164_s11  ;;  %v363_v13 = vsel %vm362_vm1, %v2343_v28, %v361_v8  ;;  %v364_v14 = vsel %vm362_vm1, %v361_v8, %v2343_v28  ;;  %v352_v28 = vadd.f32 %v344_v12, %v310_v7  ;;  %v308_v29 = vmul.f32 %v302_v50, %v2327_v20 }
  0xac   : > { %2061 = vset.pattern.permute.xlu2 %v2165_v26  ;;  %695 = vperm.xlu1 %2058, %v2284_v4   ;;  %v373_v15 = vmul.f32 %v2402_v63, %v363_v13  ;;  %v372_v18 = vmul.f32 %v2404_v3, %v364_v14  ;;  %v2169_v7 = vmov 13   ;;  %v343_v8 = vmul.f32 %v2386_v51, %v2379_v47 }
  0xad   : > { %v350_v20 = vadd.f32 %v342_v32, %v308_v29  ;;  %2071 = vset.pattern.permute.xlu0 %v2169_v7 }
  0xae   : > { %v399_v19 = vperm.slane %v373_v15, 0  ;;  %v433_v33 = vperm.slane %v373_v15, 1  ;;  %v2437_v43 = vperm.slane %v372_v18, 0  ;;  %893 = vperm.xlu0 %2071, %v2284_v4   ;;  %v2461_v17 = vperm.slane %v372_v18, 1 }
  0xb0   : > { %v403_v42 = vmul.f32 %v399_v19, %v2351_v31  ;;  %v401_v44 = vmul.f32 %v399_v19, %v2396_v61  ;;  %v435_v55 = vmul.f32 %v433_v33, %v2364_v39  ;;  %v439_v60 = vmul.f32 %v433_v33, %v2381_v48 }
  0xb1   : > { %v396_v21 = vpop.permute.xlu1 %395  ;;  %v2431_v27 = vpop.permute.xlu2 %482 }
  0xb2   : > { %v407_v35 = vmul.f32 %v399_v19, %v396_v21  ;;  %v391_v53 = vpop.permute.xlu0 %390  ;;  %v411_v54 = vadd.f32 %v403_v42, %v348_v38  ;;  %v409_v52 = vadd.f32 %v401_v44, %v346_v59  ;;  %v406_v15 = vmul.f32 %v2437_v43, %v396_v21 }
  0xb3   : > { %752 = vperm.xlu2 %2061, %v2289_v5   ;;  %v404_v25 = vmul.f32 %v2437_v43, %v391_v53  ;;  %v405_v50 = vmul.f32 %v399_v19, %v391_v53  ;;  %v1934_v19 = vld [vmem:[%s3265_s1 + $0x2] ss:$8 sm:$0x3] }
  0xb4   : > { %v415_v45 = vadd.f32 %v407_v35, %v352_v28  ;;  %2060 = vset.pattern.permute.xlu1 %v2165_v26  ;;  %v309_v26 = vmul.f32 %v2383_v49, %v2333_v22  ;;  %v2450_v12 = vadd.f32 %v435_v55, %v409_v52  ;;  %v2471_v29 = vperm.slane %v1934_v19, 0 }
  0xb5   : > { %747 = vperm.xlu1 %2060, %v2271_v1   ;;  %v412_v56 = vadd.f32 %v404_v25, %v349_v46  ;;  %v413_v57 = vadd.f32 %v405_v50, %v350_v20  ;;  %v2473_v32 = vperm.slane %v1934_v19, 1 }
  0xb6   : > { %v351_v22 = vadd.f32 %v343_v8, %v309_v26 }
  0xb7   : > { %v447_v14 = vadd.f32 %v439_v60, %v413_v57 }
  0xb8   : > { %v414_v24 = vadd.f32 %v406_v15, %v351_v22 }
  0xba   : > { %v2453_v59 = vpop.permute.xlu1 %421  ;;  %v2455_v13 = vpop.permute.xlu2 %514 }
  0xbb   : > { %v437_v16 = vmul.f32 %v433_v33, %v2453_v59  ;;  %2063 = vset.pattern.permute.xlu2 %v2167_v34  ;;  %v430_v23 = vpop.permute.xlu0 %429 }
  0xbc   : > { %784 = vperm.xlu2 %2063, %v2271_v1   ;;  %v440_v21 = vmul.f32 %v2461_v17, %v430_v23  ;;  %v441_v28 = vmul.f32 %v433_v33, %v430_v23 }
  0xbd   : > { %v2463_v47 = vadd.f32 %v437_v16, %v411_v54  ;;  %762 = vperm.xlu1 %2060, %v2284_v4  }
  0xbe   : > { %v2475_v18 = vadd.f32 %v440_v21, %v414_v24  ;;  %v2477_v35 = vadd.f32 %v441_v28, %v415_v45  ;;  %v438_v45 = vmul.f32 %v2461_v17, %v2381_v48  ;;  %v2172_v24 = vmov 15  }
  0xbf   : > { %v339_v21 = vmul.f32 %v2386_v51, %v2359_v37  ;;  %v434_v37 = vmul.f32 %v2461_v17, %v2364_v39 }
  0xc0   : > { %v446_v52 = vadd.f32 %v438_v45, %v412_v56  ;;  %v2515_v56 = vld.sshfl [vmem:[#allocation1 + $0x8] sm:$0xff pattern:$0x73625140] }
  0xc2   : > { %v456_v38 = vpop.permute.xlu1 %455  ;;  %v523_v42 = vpop.permute.xlu2 %522 }
  0xc3   : > { %v460_v44 = vsel %vm459_vm2, %v456_v38, %v2398_v62  ;;  %v461_v33 = vsel %vm459_vm2, %v2398_v62, %v456_v38 }
  0xc4   : > { %v469_v46 = vmul.f32 %v2471_v29, %v461_v33  ;;  %v470_v53 = vmul.f32 %v2473_v32, %v460_v44  ;;  %792 = vperm.xlu2 %2063, %v2266_v0   ;;  %v488_v62 = vpop.permute.xlu0 %487 }
  0xc5   : > { %2064 = vset.pattern.permute.xlu1 %v2167_v34  ;;  %v2171_v34 = vmov 14  }
  0xc6   : > { %v2490_v54 = vperm.slane %v469_v46, 0  ;;  %v2492_v20 = vperm.slane %v470_v53, 0  ;;  %v2494_v25 = vperm.slane %v469_v46, 1  ;;  %v2496_v50 = vperm.slane %v470_v53, 1  ;;  %788 = vperm.xlu1 %2064, %v2289_v5   ;;  %2074 = vset.pattern.permute.xlu0 %v2171_v34 }
  0xc7   : > { %951 = vperm.xlu0 %2074, %v2266_v0  }
  0xc8   : > { %v501_v55 = vmul.f32 %v2490_v54, %v488_v62  ;;  %v502_v57 = vmul.f32 %v2492_v20, %v488_v62  ;;  %v535_v48 = vmul.f32 %v2494_v25, %v523_v42  ;;  %v536_v60 = vmul.f32 %v2496_v50, %v523_v42 }
  0xc9   : > { %v402_v42 = vmul.f32 %v2437_v43, %v2351_v31  ;;  %v500_v39 = vmul.f32 %v2492_v20, %v2431_v27 }
  0xca   : > { %v509_v26 = vadd.f32 %v501_v55, %v446_v52  ;;  %v510_v8 = vadd.f32 %v502_v57, %v447_v14  ;;  %v478_v15 = vpop.permute.xlu1 %477  ;;  %v555_v16 = vpop.permute.xlu2 %554  ;;  %v2517_v14 = vld.sshfl [vmem:[#allocation1] sm:$0xff pattern:$0x73625140] }
  0xcb   : > { %1011 = vst [vmem:[#allocation1] ss:$4 sm:$0xff] %v2291_v6  ;;  %v498_v31 = vmul.f32 %v2492_v20, %v478_v15 }
  0xcc   : > { %v2504_v22 = vadd.f32 %v535_v48, %v509_v26  ;;  %v2506_v19 = vadd.f32 %v536_v60, %v510_v8  ;;  %824 = vrot.lane.b32.xlu2 %v2410_v10, %s2170_s18  ;;  %v532_v8 = vmul.f32 %v2496_v50, %v2455_v13 }
  0xcd   : > { %2067 = vset.pattern.permute.xlu2 %v2168_v9  ;;  %v2548_v51 = vpop.permute.xlu0 %526  ;;  %v506_v55 = vadd.f32 %v498_v31, %v2450_v12  ;;  %v508_v12 = vadd.f32 %v500_v39, %v2463_v47 }
  0xce   : > { %822 = vrot.lane.b32.xlu1 %v2412_v11, %s2170_s18  ;;  %v400_v11 = vmul.f32 %v2437_v43, %v2396_v61  ;;  %v1935_v61 = vld [vmem:[%s3265_s1 + $0x3] ss:$8 sm:$0x3] }
  0xcf   : > { %2066 = vset.pattern.permute.xlu1 %v2168_v9  ;;  %2077 = vset.pattern.permute.xlu0 %v2172_v24  ;;  %v305_v9 = vmul.f32 %v2383_v49, %v2349_v30  ;;  %v436_v30 = vmul.f32 %v2461_v17, %v2453_v59  ;;  %v497_v49 = vmul.f32 %v2490_v54, %v478_v15  ;;  %v2551_v43 = vperm.slane %v1935_v61, 0 }
  0xd0   : > { %990 = vperm.xlu0 %2077, %v2284_v4   ;;  %v408_v44 = vadd.f32 %v400_v11, %v2391_v58  ;;  %v2553_v46 = vperm.slane %v1935_v61, 1  ;;  %v499_v59 = vmul.f32 %v2490_v54, %v2431_v27  ;;  %v531_v27 = vmul.f32 %v2494_v25, %v2455_v13 }
  0xd1   : > { %v347_v33 = vadd.f32 %v339_v21, %v305_v9 }
  0xd2   : > { %v493_v23 = vpop.permute.xlu1 %492  ;;  %v2521_v10 = vpop.permute.xlu2 %579  ;;  %v442_v53 = vadd.f32 %v434_v37, %v408_v44 }
  0xd3   : > { %v410_v58 = vadd.f32 %v402_v42, %v347_v33  ;;  %v503_v61 = vmul.f32 %v2490_v54, %v493_v23  ;;  %v504_v33 = vmul.f32 %v2492_v20, %v493_v23 }
  0xd4   : > { %849 = vperm.xlu2 %2067, %v2289_v5   ;;  %v505_v52 = vadd.f32 %v497_v49, %v442_v53 }
  0xd5   : > { %v444_v17 = vadd.f32 %v436_v30, %v410_v58  ;;  %v540_v30 = vadd.f32 %v532_v8, %v506_v55 }
  0xd6   : > { %844 = vperm.xlu1 %2066, %v2271_v1   ;;  %v585_v13 = vpop.permute.xlu0 %584  ;;  %v539_v47 = vadd.f32 %v531_v27, %v505_v52  ;;  %v512_v27 = vadd.f32 %v504_v33, %v2477_v35 }
  0xd7   : > { %v507_v15 = vadd.f32 %v499_v59, %v444_v17 }
  0xdb   : > { %v519_v28 = vpop.permute.xlu1 %518  ;;  %v612_v38 = vpop.permute.xlu2 %611 }
  0xdc   : > { %2069 = vset.pattern.permute.xlu2 %v2169_v7  ;;  %v533_v11 = vmul.f32 %v2494_v25, %v519_v28  ;;  %v534_v9 = vmul.f32 %v2496_v50, %v519_v28 }
  0xdd   : > { %881 = vperm.xlu2 %2069, %v2271_v1  }
  0xde   : > { %859 = vperm.xlu1 %2066, %v2284_v4   ;;  %v541_v58 = vadd.f32 %v533_v11, %v507_v15  ;;  %v542_v53 = vadd.f32 %v534_v9, %v508_v12  ;;  %v2174_v12 = vmov 16  }
  0xdf   : > { %2080 = vset.pattern.permute.xlu0 %v2174_v12  ;;  %v624_v11 = vpop.permute.xlu0 %623 }
  0xe0   : > { %1048 = vperm.xlu0 %2080, %v2266_v0  }
  0xe3   : > { %v553_v45 = vpop.permute.xlu1 %552  ;;  %v620_v62 = vpop.permute.xlu2 %619 }
  0xe4   : > { %v557_v57 = vsel %vm556_vm3, %v553_v45, %v555_v16  ;;  %v558_v48 = vsel %vm556_vm3, %v555_v16, %v553_v45 }
  0xe5   : > { %v566_v60 = vmul.f32 %v2551_v43, %v558_v48  ;;  %v567_v26 = vmul.f32 %v2553_v46, %v557_v57  ;;  %889 = vperm.xlu2 %2069, %v2266_v0  }
  0xe6   : > { %2070 = vset.pattern.permute.xlu1 %v2169_v7 }
  0xe7   : > { %v592_v16 = vperm.slane %v566_v60, 0  ;;  %v593_v21 = vperm.slane %v567_v26, 0  ;;  %v2574_v42 = vperm.slane %v566_v60, 1  ;;  %v2576_v44 = vperm.slane %v567_v26, 1  ;;  %885 = vperm.xlu1 %2070, %v2289_v5  }
  0xe8   : > { %v661_v26 = vperm.slane %v2291_v6, 2 }
  0xe9   : > { %v598_v37 = vmul.f32 %v592_v16, %v585_v13  ;;  %v599_v49 = vmul.f32 %v593_v21, %v585_v13  ;;  %v632_v28 = vmul.f32 %v2574_v42, %v620_v62  ;;  %v633_v31 = vmul.f32 %v2576_v44, %v620_v62 }
  0xea   : > { %v596_v59 = vmul.f32 %v592_v16, %v2521_v10  ;;  %v597_v7 = vmul.f32 %v593_v21, %v2521_v10  ;;  %v628_v39 = vmul.f32 %v2574_v42, %v612_v38  ;;  %v629_v17 = vmul.f32 %v2576_v44, %v612_v38 }
  0xeb   : > { %v606_v54 = vadd.f32 %v598_v37, %v2504_v22  ;;  %v607_v20 = vadd.f32 %v599_v49, %v2506_v19  ;;  %v575_v23 = vpop.permute.xlu1 %574  ;;  %v660_v10 = vperm.slane %v2291_v6, 0  ;;  %v511_v38 = vadd.f32 %v503_v61, %v2475_v18 }
  0xec   : > { %v594_v45 = vmul.f32 %v592_v16, %v575_v23  ;;  %v595_v52 = vmul.f32 %v593_v21, %v575_v23  ;;  %v650_v55 = vpop.permute.xlu2 %649  ;;  %v604_v57 = vadd.f32 %v596_v59, %v541_v58  ;;  %v605_v62 = vadd.f32 %v597_v7, %v542_v53  ;;  %v2625_v53 = vpop.permute.xlu0 %683 }
  0xed   : > { %v2590_v48 = vadd.f32 %v632_v28, %v606_v54  ;;  %v2592_v60 = vadd.f32 %v633_v31, %v607_v20  ;;  %921 = vrot.lane.b32.xlu2 %v2515_v56, %s2173_s26  ;;  %v537_v56 = vmul.f32 %v2494_v25, %v2548_v51  ;;  %v538_v18 = vmul.f32 %v2496_v50, %v2548_v51 }
  0xee   : > { %v602_v22 = vadd.f32 %v594_v45, %v539_v47  ;;  %v603_v19 = vadd.f32 %v595_v52, %v540_v30  ;;  %2073 = vset.pattern.permute.xlu2 %v2171_v34  ;;  %v2610_v35 = vperm.slane %v660_v10, 0  ;;  %v2612_v9 = vperm.slane %v661_v26, 0 }
  0xef   : > { %919 = vrot.lane.b32.xlu1 %v2517_v14, %s2173_s26  ;;  %v545_v61 = vadd.f32 %v537_v56, %v511_v38  ;;  %v546_v33 = vadd.f32 %v538_v18, %v512_v27  ;;  %v635_v37 = vmul.f32 %v2576_v44, %v624_v11  ;;  %v2175_v58 = vmov 17  }
  0xf0   : > { %v636_v8 = vadd.f32 %v628_v39, %v602_v22  ;;  %v637_v15 = vadd.f32 %v629_v17, %v603_v19  ;;  %2072 = vset.pattern.permute.xlu1 %v2171_v34  ;;  %v634_v34 = vmul.f32 %v2574_v42, %v624_v11  ;;  %2083 = vset.pattern.permute.xlu0 %v2175_v58  ;;  %v699_v20 = vperm.slane %v2291_v6, 3 }
  0xf1   : > { %1079 = vperm.xlu0 %2083, %v2289_v5   ;;  %v668_v39 = vmul.f32 %v2610_v35, %v650_v55  ;;  %v669_v17 = vmul.f32 %v2612_v9, %v650_v55 }
  0xf2   : > { %v2636_v22 = vperm.slane %v699_v20, 1 }
  0xf3   : > { %v590_v14 = vpop.permute.xlu1 %589 }
  0xf4   : > { %v600_v13 = vmul.f32 %v592_v16, %v590_v14  ;;  %v601_v47 = vmul.f32 %v593_v21, %v590_v14  ;;  %v658_v30 = vpop.permute.xlu2 %657  ;;  %v728_v10 = vpop.permute.xlu0 %727 }
  0xf5   : > { %946 = vperm.xlu2 %2073, %v2289_v5   ;;  %v672_v50 = vmul.f32 %v2610_v35, %v658_v30  ;;  %v673_v51 = vmul.f32 %v2612_v9, %v658_v30 }
  0xf6   : > { %v608_v25 = vadd.f32 %v600_v13, %v545_v61  ;;  %v609_v49 = vadd.f32 %v601_v47, %v546_v33  ;;  %v698_v47 = vperm.slane %v2291_v6, 1 }
  0xf7   : > { %941 = vperm.xlu1 %2072, %v2271_v1  }
  0xf8   : > { %v642_v28 = vadd.f32 %v634_v34, %v608_v25  ;;  %v643_v31 = vadd.f32 %v635_v37, %v609_v49  ;;  %v1013_v34 = vld.sshfl [vmem:[#allocation1 + $0x8] sm:$0xff pattern:$0x73625140] }
  0xf9   : > { %2086 = vset.pattern.permute.xlu0 %v2151_v2 }
  0xfa   : > { %v2621_v16 = vadd.f32 %v672_v50, %v642_v28  ;;  %v2623_v21 = vadd.f32 %v673_v51, %v643_v31  ;;  %v1012_v28 = vld.sshfl [vmem:[#allocation1] sm:$0xff pattern:$0x73625140] }
  0xfc   : > { %v616_v59 = vpop.permute.xlu1 %615 }
  0xfd   : > { %v630_v7 = vmul.f32 %v2574_v42, %v616_v59  ;;  %v631_v54 = vmul.f32 %v2576_v44, %v616_v59  ;;  %2075 = vset.pattern.permute.xlu2 %v2172_v24  ;;  %v692_v23 = vpop.permute.xlu2 %691  ;;  %v1936_v42 = vld [vmem:[%s3265_s1 + $0x5] ss:$8 sm:$0x3] }
  0xfe   : > { %978 = vperm.xlu2 %2075, %v2271_v1   ;;  %v2643_v26 = vperm.slane %v1936_v42, 0  ;;  %v2645_v55 = vperm.slane %v1936_v42, 1  ;;  %v709_v59 = vmul.f32 %v2636_v22, %v692_v23 }
  0xff   : > { %v638_v45 = vadd.f32 %v630_v7, %v604_v57  ;;  %v639_v52 = vadd.f32 %v631_v54, %v605_v62  ;;  %956 = vperm.xlu1 %2072, %v2284_v4   ;;  %v705_v57 = vmul.f32 %v2636_v22, %v2625_v53  ;;  %v758_v7 = vpop.permute.xlu0 %757 }
 0x101   : > { %v676_v44 = vadd.f32 %v668_v39, %v638_v45  ;;  %v677_v19 = vadd.f32 %v669_v17, %v639_v52 }
 0x105   : > { %v646_v62 = vpop.permute.xlu1 %645  ;;  %v726_v38 = vpop.permute.xlu2 %725 }
 0x106   : > { %v666_v27 = vmul.f32 %v2610_v35, %v646_v62  ;;  %v667_v56 = vmul.f32 %v2612_v9, %v646_v62  ;;  %v730_v18 = vsel %vm729_vm4, %v726_v38, %v728_v10  ;;  %v731_v11 = vsel %vm729_vm4, %v728_v10, %v726_v38  ;;  %986 = vperm.xlu2 %2075, %v2266_v0  }
 0x107   : > { %v739_v33 = vmul.f32 %v2643_v26, %v730_v18  ;;  %v740_v13 = vmul.f32 %v2645_v55, %v731_v11  ;;  %2076 = vset.pattern.permute.xlu1 %v2172_v24 }
 0x108   : > { %v2656_v14 = vadd.f32 %v666_v27, %v636_v8  ;;  %v675_v61 = vadd.f32 %v667_v56, %v637_v15  ;;  %982 = vperm.xlu1 %2076, %v2289_v5   ;;  %v702_v8 = vperm.slane %v698_v47, 1 }
 0x109   : > { %v2665_v37 = vperm.slane %v739_v33, 0  ;;  %v2667_v25 = vperm.slane %v740_v13, 0  ;;  %v2682_v45 = vperm.slane %v739_v33, 1 }
 0x10a   : > { %v2663_v30 = vadd.f32 %v705_v57, %v675_v61  ;;  %v708_v31 = vmul.f32 %v702_v8, %v692_v23  ;;  %v2684_v23 = vperm.slane %v740_v13, 1 }
 0x10b   : > { %v772_v20 = vmul.f32 %v2667_v25, %v758_v7 }
 0x10d   : > { %v654_v49 = vpop.permute.xlu1 %653  ;;  %v753_v15 = vpop.permute.xlu2 %752 }
 0x10e   : > { %v670_v50 = vmul.f32 %v2610_v35, %v654_v49  ;;  %v671_v51 = vmul.f32 %v2612_v9, %v654_v49  ;;  %v769_v24 = vmul.f32 %v2665_v37, %v753_v15  ;;  %v770_v6 = vmul.f32 %v2667_v25, %v753_v15  ;;  %1018 = vrot.lane.b32.xlu2 %v1013_v34, %s2176_s14 }
 0x10f   : > { %2079 = vset.pattern.permute.xlu2 %v2174_v12  ;;  %v771_v9 = vmul.f32 %v2665_v37, %v758_v7  ;;  %v704_v15 = vmul.f32 %v702_v8, %v2625_v53 }
 0x110   : > { %v678_v54 = vadd.f32 %v670_v50, %v2590_v48  ;;  %v679_v35 = vadd.f32 %v671_v51, %v2592_v60  ;;  %1016 = vrot.lane.b32.xlu1 %v1012_v28, %s2176_s14 }
 0x111   : > { %2078 = vset.pattern.permute.xlu1 %v2174_v12 }
 0x112   : > { %v716_v39 = vadd.f32 %v708_v31, %v678_v54  ;;  %v717_v17 = vadd.f32 %v709_v59, %v679_v35  ;;  %v1108_v35 = vld [vmem:[%s3267_s3] sm:$0xff] }
 0x114   : > { %v779_v52 = vadd.f32 %v771_v9, %v716_v39  ;;  %v780_v42 = vadd.f32 %v772_v20, %v717_v17 }
 0x116   : > { %v785_v10 = vpop.permute.xlu2 %784  ;;  %1043 = vperm.xlu2 %2079, %v2289_v5   ;;  %v688_v48 = vpop.permute.xlu1 %687 }
 0x117   : > { %v801_v60 = vmul.f32 %v2682_v45, %v785_v10  ;;  %v802_v57 = vmul.f32 %v2684_v23, %v785_v10  ;;  %v706_v62 = vmul.f32 %v702_v8, %v688_v48  ;;  %v707_v38 = vmul.f32 %v2636_v22, %v688_v48  ;;  %v1937_v10 = vld [vmem:[%s3265_s1 + $0x6] ss:$8 sm:$0x3] }
 0x118   : > { %1038 = vperm.xlu1 %2078, %v2271_v1   ;;  %v2735_v48 = vperm.slane %v1937_v10, 0 }
 0x119   : > { %v714_v12 = vadd.f32 %v706_v62, %v676_v44  ;;  %v715_v27 = vadd.f32 %v707_v38, %v677_v19 }
 0x11b   : > { %v777_v56 = vadd.f32 %v769_v24, %v714_v12  ;;  %v778_v18 = vadd.f32 %v770_v6, %v715_v27 }
 0x11e   : > { %v793_v11 = vpop.permute.xlu2 %792  ;;  %2081 = vset.pattern.permute.xlu2 %v2175_v58  ;;  %v696_v61 = vpop.permute.xlu1 %695 }
 0x11f   : > { %v805_v5 = vmul.f32 %v2682_v45, %v793_v11  ;;  %v806_v33 = vmul.f32 %v2684_v23, %v793_v11  ;;  %1075 = vperm.xlu2 %2081, %v2271_v1   ;;  %v710_v13 = vmul.f32 %v702_v8, %v696_v61  ;;  %v711_v47 = vmul.f32 %v2636_v22, %v696_v61 }
 0x120   : > { %1053 = vperm.xlu1 %2078, %v2284_v4   ;;  %v712_v1 = vadd.f32 %v704_v15, %v2656_v14  ;;  %v797_v14 = vpop.permute.xlu0 %796 }
 0x121   : > { %v2696_v34 = vadd.f32 %v805_v5, %v779_v52  ;;  %v2698_v49 = vadd.f32 %v806_v33, %v780_v42  ;;  %v718_v44 = vadd.f32 %v710_v13, %v2621_v16  ;;  %v719_v19 = vadd.f32 %v711_v47, %v2623_v21  ;;  %v1110_v21 = vld [vmem:[%s3267_s3 + $0x10] sm:$0xff] }
 0x122   : > { %v807_v31 = vmul.f32 %v2682_v45, %v797_v14  ;;  %v808_v59 = vmul.f32 %v2684_v23, %v797_v14 }
 0x126   : > { %v825_v50 = vpop.permute.xlu2 %824 }
 0x127   : > { %1083 = vperm.xlu2 %2081, %v2266_v0   ;;  %v748_v51 = vpop.permute.xlu1 %747 }
 0x128   : > { %v767_v22 = vmul.f32 %v2665_v37, %v748_v51  ;;  %v768_v24 = vmul.f32 %v2667_v25, %v748_v51  ;;  %2082 = vset.pattern.permute.xlu1 %v2175_v58  ;;  %v1111_v58 = vld [vmem:[%s3267_s3 + $0x18] sm:$0xff]  ;;  %v855_v61 = vpop.permute.xlu0 %854 }
 0x129   : > { %1087 = vperm.xlu1 %2082, %v2284_v4  }
 0x12a   : > { %v775_v6 = vadd.f32 %v767_v22, %v712_v1  ;;  %v776_v16 = vadd.f32 %v768_v24, %v2663_v30 }
 0x12c   : > { %v809_v53 = vadd.f32 %v801_v60, %v775_v6  ;;  %v810_v0 = vadd.f32 %v802_v57, %v776_v16  ;;  %v2737_v60 = vperm.slane %v1937_v10, 1 }
 0x12e   : > { %v850_v8 = vpop.permute.xlu2 %849 }
 0x12f   : > { %2085 = vset.pattern.permute.xlu2 %v2151_v2  ;;  %v763_v28 = vpop.permute.xlu1 %762 }
 0x130   : > { %1124 = vperm.xlu2 %2085, %v1110_v21   ;;  %v773_v4 = vmul.f32 %v2665_v37, %v763_v28  ;;  %v774_v30 = vmul.f32 %v2667_v25, %v763_v28  ;;  %v1109_v37 = vld [vmem:[%s3267_s3 + $0x8] sm:$0xff] }
 0x131   : > { %2084 = vset.pattern.permute.xlu1 %v2151_v2 }
 0x132   : > { %v781_v7 = vadd.f32 %v773_v4, %v718_v44  ;;  %v782_v54 = vadd.f32 %v774_v30, %v719_v19  ;;  %1129 = vperm.xlu1 %2084, %v1111_v58  }
 0x134   : > { %v815_v9 = vadd.f32 %v807_v31, %v781_v7  ;;  %v816_v20 = vadd.f32 %v808_v59, %v782_v54 }
 0x137   : > { %v882_v39 = vpop.permute.xlu2 %881 }
 0x138   : > { %1114 = vperm.xlu2 %2085, %v1108_v35   ;;  %v789_v2 = vpop.permute.xlu1 %788 }
 0x139   : > { %v803_v25 = vmul.f32 %v2682_v45, %v789_v2  ;;  %v804_v17 = vmul.f32 %v2684_v23, %v789_v2 }
 0x13a   : > { %1119 = vperm.xlu1 %2084, %v1109_v37  }
 0x13b   : > { %v811_v52 = vadd.f32 %v803_v25, %v777_v56  ;;  %v812_v42 = vadd.f32 %v804_v17, %v778_v18 }
 0x13f   : > { %v890_v57 = vpop.permute.xlu2 %889 }
 0x140   : > { %v823_v62 = vpop.permute.xlu1 %822 }
 0x141   : > { %v827_v45 = vsel %vm826_vm5, %v823_v62, %v825_v50  ;;  %v828_v23 = vsel %vm826_vm5, %v825_v50, %v823_v62  ;;  %v1938_v62 = vld [vmem:[%s3265_s1 + $0x7] ss:$8 sm:$0x3] }
 0x142   : > { %v836_v38 = vmul.f32 %v2735_v48, %v827_v45  ;;  %v837_v12 = vmul.f32 %v2737_v60, %v828_v23  ;;  %v2757_v45 = vperm.slane %v1938_v62, 0 }
 0x144   : > { %v862_v27 = vperm.slane %v836_v38, 0  ;;  %v863_v56 = vperm.slane %v837_v12, 0  ;;  %v896_v18 = vperm.slane %v836_v38, 1  ;;  %v897_v11 = vperm.slane %v837_v12, 1 }
 0x146   : > { %v868_v5 = vmul.f32 %v862_v27, %v855_v61  ;;  %v869_v33 = vmul.f32 %v863_v56, %v855_v61  ;;  %v902_v13 = vmul.f32 %v896_v18, %v890_v57  ;;  %v903_v47 = vmul.f32 %v897_v11, %v890_v57 }
 0x147   : > { %v922_v44 = vpop.permute.xlu2 %921  ;;  %v866_v19 = vmul.f32 %v862_v27, %v850_v8  ;;  %v867_v15 = vmul.f32 %v863_v56, %v850_v8  ;;  %v898_v22 = vmul.f32 %v896_v18, %v882_v39  ;;  %v899_v24 = vmul.f32 %v897_v11, %v882_v39  ;;  %v894_v8 = vpop.permute.xlu0 %893 }
 0x148   : > { %v876_v51 = vadd.f32 %v868_v5, %v2696_v34  ;;  %v877_v50 = vadd.f32 %v869_v33, %v2698_v49  ;;  %v845_v1 = vpop.permute.xlu1 %844  ;;  %v904_v49 = vmul.f32 %v896_v18, %v894_v8  ;;  %v905_v37 = vmul.f32 %v897_v11, %v894_v8 }
 0x149   : > { %v864_v6 = vmul.f32 %v862_v27, %v845_v1  ;;  %v865_v16 = vmul.f32 %v863_v56, %v845_v1  ;;  %v874_v21 = vadd.f32 %v866_v19, %v811_v52  ;;  %v875_v14 = vadd.f32 %v867_v15, %v812_v42 }
 0x14a   : > { %v910_v28 = vadd.f32 %v902_v13, %v876_v51  ;;  %v911_v58 = vadd.f32 %v903_v47, %v877_v50 }
 0x14b   : > { %v872_v4 = vadd.f32 %v864_v6, %v809_v53  ;;  %v873_v30 = vadd.f32 %v865_v16, %v810_v0 }
 0x14d   : > { %v2747_v31 = vadd.f32 %v898_v22, %v872_v4  ;;  %v907_v59 = vadd.f32 %v899_v24, %v873_v30 }
 0x14f   : > { %v947_v7 = vpop.permute.xlu2 %946  ;;  %v952_v33 = vpop.permute.xlu0 %951 }
 0x150   : > { %v860_v54 = vpop.permute.xlu1 %859 }
 0x151   : > { %v870_v34 = vmul.f32 %v862_v27, %v860_v54  ;;  %v871_v35 = vmul.f32 %v863_v56, %v860_v54 }
 0x153   : > { %v878_v2 = vadd.f32 %v870_v34, %v815_v9  ;;  %v879_v39 = vadd.f32 %v871_v35, %v816_v20  ;;  %v2759_v9 = vperm.slane %v1938_v62, 1 }
 0x155   : > { %v2749_v25 = vadd.f32 %v904_v49, %v878_v2  ;;  %v913_v17 = vadd.f32 %v905_v37, %v879_v39 }
 0x158   : > { %v2751_v52 = vpop.permute.xlu2 %978 }
 0x159   : > { %v886_v42 = vpop.permute.xlu1 %885 }
 0x15a   : > { %v900_v53 = vmul.f32 %v896_v18, %v886_v42  ;;  %v901_v0 = vmul.f32 %v897_v11, %v886_v42 }
 0x15c   : > { %v908_v10 = vadd.f32 %v900_v53, %v874_v21  ;;  %v909_v57 = vadd.f32 %v901_v0, %v875_v14  ;;  %v1939_v0 = vld [vmem:[%s3265_s1 + $0x10] ss:$8 sm:$0x3] }
 0x160   : > { %v987_v20 = vpop.permute.xlu2 %986 }
 0x161   : > { %v920_v23 = vpop.permute.xlu1 %919 }
 0x162   : > { %v924_v38 = vsel %vm923_vm6, %v920_v23, %v922_v44  ;;  %v925_v12 = vsel %vm923_vm6, %v922_v44, %v920_v23 }
 0x163   : > { %v933_v27 = vmul.f32 %v2757_v45, %v924_v38  ;;  %v934_v56 = vmul.f32 %v2759_v9, %v925_v12 }
 0x165   : > { %v2767_v18 = vperm.slane %v933_v27, 0  ;;  %v960_v11 = vperm.slane %v934_v56, 0  ;;  %v2769_v61 = vperm.slane %v933_v27, 1  ;;  %v994_v5 = vperm.slane %v934_v56, 1 }
 0x167   : > { %v965_v13 = vmul.f32 %v2767_v18, %v952_v33  ;;  %v966_v47 = vmul.f32 %v960_v11, %v952_v33  ;;  %v1000_v19 = vmul.f32 %v994_v5, %v987_v20  ;;  %v963_v51 = vmul.f32 %v2767_v18, %v947_v7 }
 0x168   : > { %v1019_v15 = vpop.permute.xlu2 %1018  ;;  %v964_v50 = vmul.f32 %v960_v11, %v947_v7  ;;  %v999_v22 = vmul.f32 %v2769_v61, %v987_v20  ;;  %v996_v6 = vmul.f32 %v994_v5, %v2751_v52  ;;  %v991_v7 = vpop.permute.xlu0 %990 }
 0x169   : > { %v973_v44 = vadd.f32 %v965_v13, %v910_v28  ;;  %v974_v1 = vadd.f32 %v966_v47, %v911_v58  ;;  %v942_v24 = vpop.permute.xlu1 %941  ;;  %v2775_v21 = vadd.f32 %v963_v51, %v908_v10  ;;  %v1002_v35 = vmul.f32 %v994_v5, %v991_v7 }
 0x16a   : > { %v962_v16 = vmul.f32 %v960_v11, %v942_v24  ;;  %v972_v14 = vadd.f32 %v964_v50, %v909_v57  ;;  %v2789_v57 = vperm.slane %v1939_v0, 0  ;;  %v961_v20 = vmul.f32 %v2767_v18, %v942_v24 }
 0x16b   : > { %v2777_v4 = vadd.f32 %v999_v22, %v973_v44  ;;  %v2779_v30 = vadd.f32 %v1000_v19, %v974_v1  ;;  %v995_v13 = vmul.f32 %v2769_v61, %v2751_v52 }
 0x16c   : > { %v970_v8 = vadd.f32 %v962_v16, %v907_v59  ;;  %v2787_v59 = vperm.slane %v1939_v0, 1  ;;  %v969_v56 = vadd.f32 %v961_v20, %v2747_v31 }
 0x16e   : > { %v1004_v54 = vadd.f32 %v996_v6, %v970_v8  ;;  %v1003_v50 = vadd.f32 %v995_v13, %v969_v56 }
 0x170   : > { %v2781_v34 = vpop.permute.xlu2 %1043 }
 0x171   : > { %v957_v28 = vpop.permute.xlu1 %956 }
 0x172   : > { %v968_v58 = vmul.f32 %v960_v11, %v957_v28 }
 0x174   : > { %v976_v49 = vadd.f32 %v968_v58, %v913_v17 }
 0x176   : > { %v1010_v37 = vadd.f32 %v1002_v35, %v976_v49  ;;  %v967_v49 = vmul.f32 %v2767_v18, %v957_v28 }
 0x179   : > { %v1076_v2 = vpop.permute.xlu2 %1075 }
 0x17a   : > { %v983_v39 = vpop.permute.xlu1 %982 }
 0x17b   : > { %v998_v42 = vmul.f32 %v994_v5, %v983_v39 }
 0x17d   : > { %v1006_v53 = vadd.f32 %v998_v42, %v972_v14 }
 0x181   : > { %v1084_v10 = vpop.permute.xlu2 %1083 }
 0x182   : > { %v1017_v62 = vpop.permute.xlu1 %1016 }
 0x183   : > { %v1021_v17 = vsel %vm1020_vm7, %v1017_v62, %v1019_v15  ;;  %v1022_v23 = vsel %vm1020_vm7, %v1019_v15, %v1017_v62  ;;  %v1049_v62 = vpop.permute.xlu0 %1048 }
 0x184   : > { %v1031_v38 = vmul.f32 %v2787_v59, %v1022_v23  ;;  %v1030_v12 = vmul.f32 %v2789_v57, %v1021_v17 }
 0x186   : > { %v1057_v27 = vperm.slane %v1031_v38, 0  ;;  %v1056_v11 = vperm.slane %v1030_v12, 0  ;;  %v2799_v5 = vperm.slane %v1031_v38, 1  ;;  %v1090_v47 = vperm.slane %v1030_v12, 1 }
 0x188   : > { %v1061_v51 = vmul.f32 %v1057_v27, %v2781_v34  ;;  %v1093_v6 = vmul.f32 %v2799_v5, %v1076_v2  ;;  %v1092_v31 = vmul.f32 %v1090_v47, %v1076_v2  ;;  %v1001_v2 = vmul.f32 %v2769_v61, %v991_v7 }
 0x189   : > { %v1062_v17 = vmul.f32 %v1056_v11, %v1049_v62  ;;  %v1063_v23 = vmul.f32 %v1057_v27, %v1049_v62  ;;  %v1097_v7 = vmul.f32 %v2799_v5, %v1084_v10 }
 0x18a   : > { %v1125_v33 = vpop.permute.xlu2 %1124  ;;  %v1039_v19 = vpop.permute.xlu1 %1038  ;;  %v1069_v1 = vadd.f32 %v1061_v51, %v1006_v53 }
 0x18b   : > { %v1058_v15 = vmul.f32 %v1056_v11, %v1039_v19  ;;  %v1059_v44 = vmul.f32 %v1057_v27, %v1039_v19  ;;  %v1070_v18 = vadd.f32 %v1062_v17, %v2777_v4  ;;  %v1071_v28 = vadd.f32 %v1063_v23, %v2779_v30 }
 0x18c   : > { %v1060_v4 = vmul.f32 %v1056_v11, %v2781_v34  ;;  %v2847_v34 = vld [vmem:[%s3268_s4] sm:$0x3] }
 0x18d   : > { %v1066_v22 = vadd.f32 %v1058_v15, %v1003_v50  ;;  %v1067_v24 = vadd.f32 %v1059_v44, %v1004_v54  ;;  %v975_v54 = vadd.f32 %v967_v49, %v2749_v25  ;;  %v1096_v50 = vmul.f32 %v1090_v47, %v1084_v10  ;;  %1214 = vst [vmem:[#allocation1] ss:$4 sm:$0xff] %v2847_v34 }
 0x18f   : > { %v2805_v16 = vadd.f32 %v1093_v6, %v1067_v24  ;;  %v1100_v14 = vadd.f32 %v1092_v31, %v1066_v22  ;;  %v1009_v20 = vadd.f32 %v1001_v2, %v975_v54  ;;  %v997_v22 = vmul.f32 %v2769_v61, %v983_v39  ;;  %v1080_v39 = vpop.permute.xlu0 %1079 }
 0x190   : > { %v1105_v24 = vadd.f32 %v1097_v7, %v1071_v28  ;;  %v1625_v28 = vld [vmem:[%s3268_s4 + $0x2] sm:$0x3] }
 0x191   : > { %v1005_v30 = vadd.f32 %v997_v22, %v2775_v21 }
 0x192   : > { %v2807_v8 = vpop.permute.xlu2 %1114  ;;  %v1054_v58 = vpop.permute.xlu1 %1053 }
 0x193   : > { %v1132_v52 = vadd.f32 %v2807_v8, %v1100_v14  ;;  %v1064_v53 = vmul.f32 %v1056_v11, %v1054_v58  ;;  %v1065_v0 = vmul.f32 %v1057_v27, %v1054_v58  ;;  %v1104_v27 = vadd.f32 %v1096_v50, %v1070_v18 }
 0x194   : > { %v1068_v10 = vadd.f32 %v1060_v4, %v1005_v30  ;;  %v1094_v14 = vmul.f32 %v1090_v47, %v1080_v39  ;;  %v1095_v11 = vmul.f32 %v2799_v5, %v1080_v39 }
 0x195   : > { %v2810_v35 = vmax.f32 %v1132_v52, 0.0  ;;  %v1072_v56 = vadd.f32 %v1064_v53, %v1009_v20  ;;  %v1073_v13 = vadd.f32 %v1065_v0, %v1010_v37  ;;  %v1136_v61 = vadd.f32 %v1125_v33, %v1104_v27  ;;  %v1417_v0 = vld [vmem:[%s3268_s4] sm:$0x3]  ;;  %v2921_v20 = vld [vmem:[%s3268_s4 + $0x2] sm:$0x3] }
 0x196   : > { %v1137_v37 = vadd.f32 %v1125_v33, %v1105_v24  ;;  %v1102_v54 = vadd.f32 %v1094_v14, %v1068_v10  ;;  %v1707_v27 = vld [vmem:[%s3268_s4 + $0x2] sm:$0x3] }
 0x197   : > { %1148 = vrot.lane.b32.xlu0 %v2810_v35, %s2153_s28  ;;  %v2834_v52 = vmax.f32 %v1136_v61, 0.0 }
 0x198   : > { %v2836_v58 = vmax.f32 %v1137_v37, 0.0 }
 0x19b   : > { %v1088_v42 = vpop.permute.xlu1 %1087 }
 0x19c   : > { %v1098_v38 = vmul.f32 %v1090_v47, %v1088_v42  ;;  %v1099_v12 = vmul.f32 %v2799_v5, %v1088_v42  ;;  %v1103_v47 = vadd.f32 %v1095_v11, %v1069_v1  ;;  %v1133_v5 = vadd.f32 %v2807_v8, %v2805_v16  ;;  %v1215_v16 = vld.sshfl [vmem:[#allocation1] sm:$0xff pattern:$0x73625140] }
 0x19d   : > { %v1335_v8 = vld [vmem:[%s3268_s4] sm:$0x3] }
 0x19e   : > { %v1106_v19 = vadd.f32 %v1098_v38, %v1072_v56  ;;  %v1107_v25 = vadd.f32 %v1099_v12, %v1073_v13  ;;  %v2869_v1 = vmax.f32 %v1133_v5, 0.0  ;;  %1337 = vst [vmem:[#allocation1] ss:$4 sm:$0xff] %v1335_v8 }
 0x1a4   : > { %v1130_v51 = vpop.permute.xlu1 %1129 }
 0x1a5   : > { %v1138_v15 = vadd.f32 %v1130_v51, %v1106_v19  ;;  %v1139_v44 = vadd.f32 %v1130_v51, %v1107_v25  ;;  %v1338_v53 = vld.sshfl [vmem:[#allocation1] sm:$0xff pattern:$0x73625140] }
 0x1a6   : > { %1419 = vst [vmem:[#allocation1] ss:$4 sm:$0xff] %v1417_v0 }
 0x1a7   : > { %v2822_v6 = vmax.f32 %v1138_v15, 0.0  ;;  %v2824_v31 = vmax.f32 %v1139_v44, 0.0 }
 0x1a9   : > { %1162 = vrot.lane.b32.xlu2 %v2824_v31, %s2153_s28  ;;  %1187 = vrot.lane.b32.xlu0 %v2822_v6, %s2154_s29 }
 0x1aa   : > { %1154 = vrot.lane.b32.xlu1 %v2822_v6, %s2153_s28 }
 0x1ac   : > { %v1120_v49 = vpop.permute.xlu1 %1119 }
 0x1ad   : > { %v1134_v21 = vadd.f32 %v1120_v49, %v1102_v54  ;;  %v1135_v42 = vadd.f32 %v1120_v49, %v1103_v47  ;;  %v1420_v62 = vld.sshfl [vmem:[#allocation1] sm:$0xff pattern:$0x73625140] }
 0x1ae   : > { %1545 = vst [vmem:[#allocation1] ss:$4 sm:$0xff] %v2921_v20 }
 0x1af   : > { %v2851_v33 = vmax.f32 %v1134_v21, 0.0  ;;  %v2859_v2 = vmax.f32 %v1135_v42, 0.0 }
 0x1b1   : > { %1152 = vrot.lane.b32.xlu2 %v2834_v52, %s2153_s28  ;;  %1160 = vrot.lane.b32.xlu0 %v2836_v58, %s2153_s28 }
 0x1b2   : > { %1195 = vrot.lane.b32.xlu1 %v2824_v31, %s2154_s29 }
 0x1b5   : > { %v1546_v18 = vld.sshfl [vmem:[#allocation1] sm:$0xff pattern:$0x73625140] }
 0x1b6   : > { %1627 = vst [vmem:[#allocation1] ss:$4 sm:$0xff] %v1625_v28 }
 0x1b9   : > { %1193 = vrot.lane.b32.xlu2 %v2836_v58, %s2154_s29  ;;  %1150 = vrot.lane.b32.xlu0 %v2851_v33, %s2153_s28 }
 0x1ba   : > { %1185 = vrot.lane.b32.xlu1 %v2834_v52, %s2154_s29 }
 0x1bd   : > { %v2962_v22 = vld.sshfl [vmem:[#allocation1] sm:$0xff pattern:$0x73625140] }
 0x1be   : > { %1709 = vst [vmem:[#allocation1] ss:$4 sm:$0xff] %v1707_v27 }
 0x1c1   : > { %1183 = vrot.lane.b32.xlu2 %v2851_v33, %s2154_s29  ;;  %1191 = vrot.lane.b32.xlu0 %v2859_v2, %s2154_s29 }
 0x1c2   : > { %1158 = vrot.lane.b32.xlu1 %v2859_v2, %s2153_s28 }
 0x1c9   : > { %1181 = vrot.lane.b32.xlu2 %v2810_v35, %s2154_s29  ;;  %1189 = vrot.lane.b32.xlu0 %v2869_v1, %s2154_s29  ;;  %s2177_s29 = smov 96  }
 0x1ca   : > { %1156 = vrot.lane.b32.xlu1 %v2869_v1, %s2153_s28 }
 0x1d1   : > { %1317 = vrot.lane.b32.xlu2 %v2824_v31, %s2157_s9  ;;  %1391 = vrot.lane.b32.xlu0 %v2822_v6, %s2162_s10 }
 0x1d2   : > { %1309 = vrot.lane.b32.xlu1 %v2822_v6, %s2157_s9 }
 0x1d9   : > { %1307 = vrot.lane.b32.xlu0 %v2834_v52, %s2157_s9  ;;  %1216 = vrot.lane.b32.xlu2 %v1215_v16, %s2177_s29 }
 0x1da   : > { %1399 = vrot.lane.b32.xlu1 %v2824_v31, %s2162_s10 }
 0x1e1   : > { %1397 = vrot.lane.b32.xlu0 %v2836_v58, %s2162_s10  ;;  %1389 = vrot.lane.b32.xlu2 %v2834_v52, %s2162_s10 }
 0x1e2   : > { %1315 = vrot.lane.b32.xlu1 %v2836_v58, %s2157_s9 }
 0x1e9   : > { %1387 = vrot.lane.b32.xlu0 %v2851_v33, %s2162_s10  ;;  %1313 = vrot.lane.b32.xlu2 %v2859_v2, %s2157_s9 }
 0x1ea   : > { %1305 = vrot.lane.b32.xlu1 %v2851_v33, %s2157_s9 }
 0x1f1   : > { %1311 = vrot.lane.b32.xlu0 %v2869_v1, %s2157_s9  ;;  %1303 = vrot.lane.b32.xlu2 %v2810_v35, %s2157_s9  ;;  %s2178_s9 = smov 64  }
 0x1f2   : > { %1395 = vrot.lane.b32.xlu1 %v2859_v2, %s2162_s10 }
 0x1f9   : > { %1519 = vrot.lane.b32.xlu0 %v2822_v6, %s2164_s11  ;;  %1393 = vrot.lane.b32.xlu2 %v2869_v1, %s2162_s10 }
 0x1fa   : > { %1385 = vrot.lane.b32.xlu1 %v2810_v35, %s2162_s10 }
 0x201   : > { %1339 = vrot.lane.b32.xlu2 %v1338_v53, %s2178_s9  ;;  %1421 = vrot.lane.b32.xlu0 %v1420_v62, %s2179_s15 }
 0x202   : > { %1527 = vrot.lane.b32.xlu1 %v2824_v31, %s2164_s11 }
 0x203   : > { %v1163_v17 = vpop.permute.xlu2 %1162 }
 0x209   : > { %1525 = vrot.lane.b32.xlu2 %v2836_v58, %s2164_s11  ;;  %1515 = vrot.lane.b32.xlu0 %v2851_v33, %s2164_s11  ;;  %v2940_v38 = vpop.permute.xlu0 %1148 }
 0x20a   : > { %1517 = vrot.lane.b32.xlu1 %v2834_v52, %s2164_s11 }
 0x20b   : > { %v1153_v23 = vpop.permute.xlu2 %1152 }
 0x211   : > { %1513 = vrot.lane.b32.xlu2 %v2810_v35, %s2164_s11  ;;  %1521 = vrot.lane.b32.xlu0 %v2869_v1, %s2164_s11 }
 0x212   : > { %1523 = vrot.lane.b32.xlu1 %v2859_v2, %s2164_s11 }
 0x213   : > { %v1194_v12 = vpop.permute.xlu2 %1193 }
 0x219   : > { %1607 = vrot.lane.b32.xlu2 %v2824_v31, %s2170_s18  ;;  %1681 = vrot.lane.b32.xlu0 %v2822_v6, %s2173_s26 }
 0x21a   : > { %1599 = vrot.lane.b32.xlu1 %v2822_v6, %s2170_s18 }
 0x21b   : > { %v1188_v56 = vpop.permute.xlu0 %1187  ;;  %v1184_v13 = vpop.permute.xlu2 %1183 }
 0x21c   : > { %v1155_v19 = vpop.permute.xlu1 %1154 }
 0x21d   : > { %v1171_v25 = vsel %vm266_vm0, %v1163_v17, %v1155_v19  ;;  %v1167_v51 = vsel %vm266_vm0, %v1155_v19, %v1163_v17 }
 0x21e   : > { %v1178_v50 = vmul.f32 %v1171_v25, %v2369_v40  ;;  %v1179_v7 = vmul.f32 %v1167_v51, %v2371_v41 }
 0x220   : > { %1275 = vmatpush.msra.mxu2 %v1178_v50  ;;  %1295 = vmatpush.msra.mxu3 %v1179_v7 }
 0x221   : > { %1597 = vrot.lane.b32.xlu0 %v2834_v52, %s2170_s18  ;;  %1547 = vrot.lane.b32.xlu2 %v1546_v18, %s2177_s29  ;;  %s243_s29 = sand.u32 1, %s2141_s22  }
 0x222   : > { %1689 = vrot.lane.b32.xlu1 %v2824_v31, %s2173_s26  ;;  %s1930_s28 = sshll.u32 %s243_s29, 2  ;;  %s1851_s25 = scalar_lea.sflag [#allocation3], %s243_s29 }
 0x223   : > { %v1161_v15 = vpop.permute.xlu0 %1160  ;;  %v1182_v44 = vpop.permute.xlu2 %1181 }
 0x224   : > { %v1166_v24 = vsel %vm266_vm0, %v1153_v23, %v1161_v15  ;;  %v1170_v4 = vsel %vm266_vm0, %v1161_v15, %v1153_v23  ;;  %v1196_v30 = vpop.permute.xlu1 %1195 }
 0x225   : > { %v1204_v61 = vsel %vm362_vm1, %v1196_v30, %v1188_v56  ;;  %v1200_v37 = vsel %vm362_vm1, %v1188_v56, %v1196_v30  ;;  %v1176_v39 = vmul.f32 %v1170_v4, %v2369_v40  ;;  %v1177_v10 = vmul.f32 %v1166_v24, %v2371_v41 }
 0x226   : > { %v1211_v14 = vmul.f32 %v1204_v61, %v2404_v3  ;;  %v1212_v49 = vmul.f32 %v1200_v37, %v2402_v63 }
 0x227   : > { %1276 = vmatpush.msra.mxu2 %v1176_v39  ;;  %1296 = vmatpush.msra.mxu3 %v1177_v10  ;;  %v1710_v39 = vld.sshfl [vmem:[#allocation1] sm:$0xff pattern:$0x73625140] }
 0x228   : > { %1233 = vmatpush.msra.mxu0 %v1211_v14  ;;  %1253 = vmatpush.msra.mxu1 %v1212_v49 }
 0x229   : > { %1687 = vrot.lane.b32.xlu0 %v2836_v58, %s2173_s26  ;;  %1679 = vrot.lane.b32.xlu2 %v2834_v52, %s2173_s26 }
 0x22a   : > { %1605 = vrot.lane.b32.xlu1 %v2836_v58, %s2170_s18 }
 0x22b   : > { %v1318_v54 = vpop.permute.xlu2 %1317  ;;  %v1151_v21 = vpop.permute.xlu0 %1150 }
 0x22c   : > { %v1186_v11 = vpop.permute.xlu1 %1185 }
 0x22d   : > { %v1199_v47 = vsel %vm362_vm1, %v1186_v11, %v1194_v12  ;;  %v1203_v42 = vsel %vm362_vm1, %v1194_v12, %v1186_v11 }
 0x22e   : > { %v1209_v5 = vmul.f32 %v1203_v42, %v2404_v3  ;;  %v1210_v16 = vmul.f32 %v1199_v47, %v2402_v63 }
 0x230   : > { %1234 = vmatpush.msra.mxu0 %v1209_v5  ;;  %1254 = vmatpush.msra.mxu1 %v1210_v16 }
 0x231   : > { %1677 = vrot.lane.b32.xlu0 %v2851_v33, %s2173_s26  ;;  %1603 = vrot.lane.b32.xlu2 %v2859_v2, %s2170_s18 }
 0x232   : > { %1595 = vrot.lane.b32.xlu1 %v2851_v33, %s2170_s18 }
 0x233   : > { %v1192_v8 = vpop.permute.xlu0 %1191  ;;  %v1217_v53 = vpop.permute.xlu2 %1216 }
 0x234   : > { %v1198_v0 = vsel %vm362_vm1, %v1184_v13, %v1192_v8  ;;  %v1202_v62 = vsel %vm362_vm1, %v1192_v8, %v1184_v13  ;;  %v1159_v17 = vpop.permute.xlu1 %1158 }
 0x235   : > { %v1165_v23 = vsel %vm266_vm0, %v1151_v21, %v1159_v17  ;;  %v1169_v12 = vsel %vm266_vm0, %v1159_v17, %v1151_v21  ;;  %v1207_v56 = vmul.f32 %v1202_v62, %v2404_v3  ;;  %v1208_v18 = vmul.f32 %v1198_v0, %v2402_v63 }
 0x236   : > { %v1174_v28 = vmul.f32 %v1169_v12, %v2369_v40  ;;  %v1175_v19 = vmul.f32 %v1165_v23, %v2371_v41 }
 0x237   : > { %1235 = vmatpush.msra.mxu0 %v1207_v56  ;;  %1255 = vmatpush.msra.mxu1 %v1208_v18 }
 0x238   : > { %1277 = vmatpush.msra.mxu2 %v1174_v28  ;;  %1297 = vmatpush.msra.mxu3 %v1175_v19 }
 0x239   : > { %1601 = vrot.lane.b32.xlu0 %v2869_v1, %s2170_s18  ;;  %1593 = vrot.lane.b32.xlu2 %v2810_v35, %s2170_s18 }
 0x23a   : > { %1685 = vrot.lane.b32.xlu1 %v2859_v2, %s2173_s26 }
 0x23b   : > { %v1190_v13 = vpop.permute.xlu0 %1189  ;;  %v1390_v25 = vpop.permute.xlu2 %1389 }
 0x23c   : > { %v1197_v51 = vsel %vm362_vm1, %v1182_v44, %v1190_v13  ;;  %v1201_v50 = vsel %vm362_vm1, %v1190_v13, %v1182_v44  ;;  %v1157_v7 = vpop.permute.xlu1 %1156 }
 0x23d   : > { %v1164_v15 = vsel %vm266_vm0, %v2940_v38, %v1157_v7  ;;  %v1168_v27 = vsel %vm266_vm0, %v1157_v7, %v2940_v38  ;;  %v1205_v24 = vmul.f32 %v1201_v50, %v2404_v3  ;;  %v1206_v4 = vmul.f32 %v1197_v51, %v2402_v63  ;;  %v1835_v51 = vld [vmem:[%s3269_s5] sm:$0x3] }
 0x23e   : > { %v1172_v30 = vmul.f32 %v1168_v27, %v2369_v40  ;;  %v1173_v61 = vmul.f32 %v1164_v15, %v2371_v41 }
 0x23f   : > { %1236 = vmatpush.msra.mxu0 %v1205_v24  ;;  %1256 = vmatpush.msra.mxu1 %v1206_v4 }
 0x240   : > { %1278 = vmatpush.msra.mxu2 %v1172_v30  ;;  %1298 = vmatpush.msra.mxu3 %v1173_v61 }
 0x241   : > { %1763 = vrot.lane.b32.xlu0 %v2822_v6, %s2176_s14  ;;  %1683 = vrot.lane.b32.xlu2 %v2869_v1, %s2173_s26 }
 0x242   : > { %1675 = vrot.lane.b32.xlu1 %v2810_v35, %s2173_s26  ;;  %1942 = vmatmul.msk.f32.vlgmr.msra.gmra.mxu2 %vm1218_vm8, %v2847_v34 }
 0x243   : > { %v1392_v40 = vpop.permute.xlu0 %1391  ;;  %v1314_v63 = vpop.permute.xlu2 %1313  ;;  %1943 = vmatmul.msk.f32.vlgmr.msra.gmra.mxu3 %vm1218_vm8, %v2847_v34  ;;  %1940 = vmatmul.msk.f32.vlgmr.msra.gmra.mxu0 %vm1218_vm8, %v1217_v53 }
 0x244   : > { %v1310_v41 = vpop.permute.xlu1 %1309  ;;  %1941 = vmatmul.msk.f32.vlgmr.msra.gmra.mxu1 %vm1218_vm8, %v1217_v53 }
 0x245   : > { %v1322_v3 = vsel %vm459_vm2, %v1310_v41, %v1318_v54  ;;  %v1326_v38 = vsel %vm459_vm2, %v1318_v54, %v1310_v41 }
 0x246   : > { %v1333_v44 = vmul.f32 %v1326_v38, %v2471_v29  ;;  %v1334_v37 = vmul.f32 %v1322_v3, %v2473_v32 }
 0x248   : > { %1355 = vmatpush.msrb.mxu0 %v1333_v44  ;;  %1375 = vmatpush.msrb.mxu1 %v1334_v37 }
 0x249   : > { %1629 = vrot.lane.b32.xlu2 %v2962_v22, %s2178_s9  ;;  %1711 = vrot.lane.b32.xlu0 %v1710_v39, %s2179_s15  ;;  %s1862_s9 = scalar_lea.hbm %s3270_s6, %s1963_s20  ;;  %s245_s15 = scalar_lea.vmem [#allocation2], %s1930_s28 }
 0x24a   : > { %1771 = vrot.lane.b32.xlu1 %v2824_v31, %s2176_s14  ;;  %s1864_s10 = sshll.u32 %s245_s15, 4  ;;  %s1866_s16 = sshll.u32 %s1862_s9, 4  ;;  %s1865_s10 = int_to_ptr.vmem [resolvable:$true] %s1864_s10  ;;  %s1867_s16 = int_to_ptr.hbm [resolvable:$true] %s1866_s16 }
 0x24b   : > { %v1308_v34 = vpop.permute.xlu0 %1307  ;;  %v1304_v10 = vpop.permute.xlu2 %1303  ;;  %s2101_s11 = sshra.s32 %s1867_s16, 4  ;;  %s2102_s11 = int_to_ptr.hbm [resolvable:$true] %s2101_s11 }
 0x24c   : > { %v1400_v14 = vpop.permute.xlu1 %1399  ;;  %s2103_s17 = scalar_lea.hbm %s2102_s11, 4  ;;  %p2108_p0 = scmp.lt.s32.totalorder %s2102_s11, %s3270_s6 }
 0x24d   : > { %v1404_v49 = vsel %vm556_vm3, %v1392_v40, %v1400_v14  ;;  %v1408_v54 = vsel %vm556_vm3, %v1400_v14, %v1392_v40  ;;  %p2104_p11 = scmp.ne.s32.totalorder %s2102_s11, %s2103_s17 }
 0x24e   : > { %v1415_v21 = vmul.f32 %v1408_v54, %v2551_v43  ;;  %v1416_v11 = vmul.f32 %v1404_v49, %v2553_v46 }
 0x24f   : > { %p2105_p12 = pnand %p2104_p11, %p2253_p5 }
 0x250   : > { %1437 = vmatpush.msrb.mxu2 %v1415_v21  ;;  %1457 = vmatpush.msrb.mxu3 %v1416_v11 }
 0x251   : > { %1769 = vrot.lane.b32.xlu2 %v2836_v58, %s2176_s14  ;;  %1759 = vrot.lane.b32.xlu0 %v2851_v33, %s2176_s14  ;;  %p2106_p13 = pneg %p2105_p12 }
 0x252   : > { %1761 = vrot.lane.b32.xlu1 %v2834_v52, %s2176_s14 }
 0x253   : > { %v1398_v22 = vpop.permute.xlu0 %1397  ;;  %v1394_v47 = vpop.permute.xlu2 %1393 }
 0x254   : > { %v1403_v42 = vsel %vm556_vm3, %v1390_v25, %v1398_v22  ;;  %v1407_v5 = vsel %vm556_vm3, %v1398_v22, %v1390_v25  ;;  %v1316_v16 = vpop.permute.xlu1 %1315 }
 0x255   : > { %v1321_v8 = vsel %vm459_vm2, %v1308_v34, %v1316_v16  ;;  %v1325_v53 = vsel %vm459_vm2, %v1316_v16, %v1308_v34  ;;  %v1413_v0 = vmul.f32 %v1407_v5, %v2551_v43  ;;  %v1414_v62 = vmul.f32 %v1403_v42, %v2553_v46 }
 0x256   : > { %v1331_v17 = vmul.f32 %v1325_v53, %v2471_v29  ;;  %v1332_v23 = vmul.f32 %v1321_v8, %v2473_v32 }
 0x257   : > { %1438 = vmatpush.msrb.mxu2 %v1413_v0  ;;  %1458 = vmatpush.msrb.mxu3 %v1414_v62 }
 0x258   : > { %1356 = vmatpush.msrb.mxu0 %v1331_v17  ;;  %1376 = vmatpush.msrb.mxu1 %v1332_v23 }
 0x259   : > { %1757 = vrot.lane.b32.xlu2 %v2810_v35, %s2176_s14  ;;  %1765 = vrot.lane.b32.xlu0 %v2869_v1, %s2176_s14 }
 0x25a   : > { %1767 = vrot.lane.b32.xlu1 %v2859_v2, %s2176_s14  ;;  %s2107_s14 = scalar_lea.hbm %s3270_s6, 8 }
 0x25b   : > { %v1388_v12 = vpop.permute.xlu0 %1387  ;;  %v1340_v56 = vpop.permute.xlu2 %1339  ;;  %p2109_p1 = scmp.lt.s32.totalorder %s2107_s14, %s2103_s17 }
 0x25c   : > { %v1306_v18 = vpop.permute.xlu1 %1305 }
 0x25d   : > { %v1320_v28 = vsel %vm459_vm2, %v1306_v18, %v1314_v63  ;;  %v1324_v19 = vsel %vm459_vm2, %v1314_v63, %v1306_v18  ;;  %p2110_p2 = por %p2109_p1, %p2108_p0 }
 0x25e   : > { %v1329_v13 = vmul.f32 %v1324_v19, %v2471_v29  ;;  %v1330_v25 = vmul.f32 %v1320_v28, %v2473_v32 }
 0x25f   : > { %p2111_p3 = pnand %p2110_p2, %p2106_p13 }
 0x260   : > { %1357 = vmatpush.msrb.mxu0 %v1329_v13  ;;  %1377 = vmatpush.msrb.mxu1 %v1330_v25 }
 0x262   : > { %1838 = vperm.xlu1 %2084, %v1835_v51  }
 0x263   : > { %v1312_v50 = vpop.permute.xlu0 %1311  ;;  %v1526_v7 = vpop.permute.xlu2 %1525 }
 0x264   : > { %v1319_v15 = vsel %vm459_vm2, %v1304_v10, %v1312_v50  ;;  %v1323_v27 = vsel %vm459_vm2, %v1312_v50, %v1304_v10  ;;  %v1396_v24 = vpop.permute.xlu1 %1395 }
 0x265   : > { %v1402_v4 = vsel %vm556_vm3, %v1388_v12, %v1396_v24  ;;  %v1406_v30 = vsel %vm556_vm3, %v1396_v24, %v1388_v12  ;;  %v1327_v61 = vmul.f32 %v1323_v27, %v2471_v29  ;;  %v1328_v40 = vmul.f32 %v1319_v15, %v2473_v32 }
 0x266   : > { %v1411_v63 = vmul.f32 %v1406_v30, %v2551_v43  ;;  %v1412_v41 = vmul.f32 %v1402_v4, %v2553_v46 }
 0x267   : > { %1358 = vmatpush.msrb.mxu0 %v1327_v61  ;;  %1378 = vmatpush.msrb.mxu1 %v1328_v40 }
 0x268   : > { %1439 = vmatpush.msrb.mxu2 %v1411_v63  ;;  %1459 = vmatpush.msrb.mxu3 %v1412_v41 }
 0x269   : > { %1944 = vmatmul.msk.f32.vlgmr.msrb.gmra.mxu0 %vm1218_vm8, %v1340_v56  ;;  %1945 = vmatmul.msk.f32.vlgmr.msrb.gmra.mxu1 %vm1218_vm8, %v1340_v56 }
 0x26a   : > { %1483 = vmatpush.msra.mxu0 %v2822_v6  ;;  %1503 = vmatpush.msra.mxu1 %v2824_v31 }
 0x26b   : > { %v1520_v3 = vpop.permute.xlu0 %1519  ;;  %v1514_v29 = vpop.permute.xlu2 %1513 }
 0x26c   : > { %1484 = vmatpush.msra.mxu0 %v2834_v52  ;;  %1504 = vmatpush.msra.mxu1 %v2836_v58  ;;  %v1386_v32 = vpop.permute.xlu1 %1385 }
 0x26d   : > { %v1401_v38 = vsel %vm556_vm3, %v1386_v32, %v1394_v47  ;;  %v1405_v44 = vsel %vm556_vm3, %v1394_v47, %v1386_v32 }
 0x26e   : > { %1485 = vmatpush.msra.mxu0 %v2851_v33  ;;  %1505 = vmatpush.msra.mxu1 %v2859_v2  ;;  %v1409_v6 = vmul.f32 %v1405_v44, %v2551_v43  ;;  %v1410_v31 = vmul.f32 %v1401_v38, %v2553_v46 }
 0x270   : > { %1486 = vmatpush.msra.mxu0 %v2810_v35  ;;  %1506 = vmatpush.msra.mxu1 %v2869_v1 }
 0x271   : > { %1440 = vmatpush.msrb.mxu2 %v1409_v6  ;;  %1460 = vmatpush.msrb.mxu3 %v1410_v31 }
 0x272   : > { %1948 = vmatmul.msk.f32.vlgmr.msra.gmra.mxu0 %vm1218_vm8, %v2921_v20  ;;  %1949 = vmatmul.msk.f32.vlgmr.msra.gmra.mxu1 %vm1218_vm8, %v2921_v20 }
 0x273   : > { %v1422_v52 = vpop.permute.xlu0 %1421  ;;  %v1608_v33 = vpop.permute.xlu2 %1607 }
 0x274   : > { %v1528_v58 = vpop.permute.xlu1 %1527  ;;  %1946 = vmatmul.msk.f32.vlgmr.msrb.gmra.mxu2 %vm1218_vm8, %v1422_v52  ;;  %1947 = vmatmul.msk.f32.vlgmr.msrb.gmra.mxu3 %vm1218_vm8, %v1422_v52 }
 0x275   : > { %v1532_v43 = vsel %vm729_vm4, %v1520_v3, %v1528_v58  ;;  %v1536_v46 = vsel %vm729_vm4, %v1528_v58, %v1520_v3 }
 0x276   : > { %v1543_v35 = vmul.f32 %v1532_v43, %v2643_v26  ;;  %v1544_v2 = vmul.f32 %v1536_v46, %v2645_v55 }
 0x278   : > { %1563 = vmatpush.msra.mxu2 %v1543_v35  ;;  %1583 = vmatpush.msra.mxu3 %v1544_v2 }
 0x27b   : > { %v1516_v1 = vpop.permute.xlu0 %1515  ;;  %v1548_v14 = vpop.permute.xlu2 %1547 }
 0x27c   : > { %v1518_v20 = vpop.permute.xlu1 %1517 }
 0x27d   : > { %v1531_v37 = vsel %vm729_vm4, %v1518_v20, %v1526_v7  ;;  %v1535_v39 = vsel %vm729_vm4, %v1526_v7, %v1518_v20 }
 0x27e   : > { %v1541_v34 = vmul.f32 %v1531_v37, %v2643_v26  ;;  %v1542_v10 = vmul.f32 %v1535_v39, %v2645_v55 }
 0x280   : > { %1564 = vmatpush.msra.mxu2 %v1541_v34  ;;  %1584 = vmatpush.msra.mxu3 %v1542_v10 }
 0x283   : > { %v1522_v49 = vpop.permute.xlu0 %1521  ;;  %v1680_v53 = vpop.permute.xlu2 %1679 }
 0x284   : > { %v1524_v54 = vpop.permute.xlu1 %1523  ;;  %v1529_v22 = vsel %vm729_vm4, %v1514_v29, %v1522_v49  ;;  %v1533_v47 = vsel %vm729_vm4, %v1522_v49, %v1514_v29 }
 0x285   : > { %v1530_v21 = vsel %vm729_vm4, %v1516_v1, %v1524_v54  ;;  %v1534_v11 = vsel %vm729_vm4, %v1524_v54, %v1516_v1  ;;  %v1537_v16 = vmul.f32 %v1529_v22, %v2643_v26  ;;  %v1538_v8 = vmul.f32 %v1533_v47, %v2645_v55 }
 0x286   : > { %v1539_v42 = vmul.f32 %v1530_v21, %v2643_v26  ;;  %v1540_v5 = vmul.f32 %v1534_v11, %v2645_v55 }
 0x288   : > { %1565 = vmatpush.msra.mxu2 %v1539_v42  ;;  %1585 = vmatpush.msra.mxu3 %v1540_v5 }
 0x28a   : > { %1566 = vmatpush.msra.mxu2 %v1537_v16  ;;  %1586 = vmatpush.msra.mxu3 %v1538_v8 }
 0x28b   : > { %1950 = vmatmul.msk.f32.vlgmr.msra.gmra.mxu2 %vm1218_vm8, %v1548_v14  ;;  %1951 = vmatmul.msk.f32.vlgmr.msra.gmra.mxu3 %vm1218_vm8, %v1548_v14  ;;  %v1682_v0 = vpop.permute.xlu0 %1681  ;;  %v1604_v12 = vpop.permute.xlu2 %1603 }
 0x28c   : > { %v1600_v62 = vpop.permute.xlu1 %1599 }
 0x28d   : > { %v1612_v17 = vsel %vm826_vm5, %v1600_v62, %v1608_v33  ;;  %v1616_v23 = vsel %vm826_vm5, %v1608_v33, %v1600_v62 }
 0x28e   : > { %v1623_v26 = vmul.f32 %v1612_v17, %v2735_v48  ;;  %v1624_v55 = vmul.f32 %v1616_v23, %v2737_v60 }
 0x290   : > { %1645 = vmatpush.msrb.mxu0 %v1623_v26  ;;  %1665 = vmatpush.msrb.mxu1 %v1624_v55 }
 0x293   : > { %v1598_v56 = vpop.permute.xlu0 %1597  ;;  %v1594_v50 = vpop.permute.xlu2 %1593 }
 0x294   : > { %v1690_v18 = vpop.permute.xlu1 %1689 }
 0x295   : > { %v1694_v28 = vsel %vm923_vm6, %v1682_v0, %v1690_v18  ;;  %v1698_v19 = vsel %vm923_vm6, %v1690_v18, %v1682_v0 }
 0x296   : > { %v1705_v13 = vmul.f32 %v1694_v28, %v2757_v45  ;;  %v1706_v25 = vmul.f32 %v1698_v19, %v2759_v9 }
 0x298   : > { %1727 = vmatpush.msrb.mxu2 %v1705_v13  ;;  %1747 = vmatpush.msrb.mxu3 %v1706_v25  ;;  %v1789_v13 = vld [vmem:[%s3268_s4 + $0x4] sm:$0x3] }
 0x29b   : > { %v1688_v51 = vpop.permute.xlu0 %1687  ;;  %v1684_v38 = vpop.permute.xlu2 %1683 }
 0x29c   : > { %v1606_v7 = vpop.permute.xlu1 %1605  ;;  %v1693_v15 = vsel %vm923_vm6, %v1680_v53, %v1688_v51  ;;  %v1697_v27 = vsel %vm923_vm6, %v1688_v51, %v1680_v53 }
 0x29d   : > { %v1611_v24 = vsel %vm826_vm5, %v1598_v56, %v1606_v7  ;;  %v1615_v4 = vsel %vm826_vm5, %v1606_v7, %v1598_v56  ;;  %v1703_v30 = vmul.f32 %v1693_v15, %v2757_v45  ;;  %v1704_v61 = vmul.f32 %v1697_v27, %v2759_v9 }
 0x29e   : > { %v1621_v40 = vmul.f32 %v1611_v24, %v2735_v48  ;;  %v1622_v63 = vmul.f32 %v1615_v4, %v2737_v60 }
 0x29f   : > { %1728 = vmatpush.msrb.mxu2 %v1703_v30  ;;  %1748 = vmatpush.msrb.mxu3 %v1704_v61 }
 0x2a0   : > { %1646 = vmatpush.msrb.mxu0 %v1621_v40  ;;  %1666 = vmatpush.msrb.mxu1 %v1622_v63 }
 0x2a3   : > { %v1678_v41 = vpop.permute.xlu0 %1677  ;;  %v1630_v37 = vpop.permute.xlu2 %1629 }
 0x2a4   : > { %v1596_v3 = vpop.permute.xlu1 %1595 }
 0x2a5   : > { %v1610_v29 = vsel %vm826_vm5, %v1596_v3, %v1604_v12  ;;  %v1614_v32 = vsel %vm826_vm5, %v1604_v12, %v1596_v3 }
 0x2a6   : > { %v1619_v44 = vmul.f32 %v1610_v29, %v2735_v48  ;;  %v1620_v6 = vmul.f32 %v1614_v32, %v2737_v60 }
 0x2a8   : > { %1647 = vmatpush.msrb.mxu0 %v1619_v44  ;;  %1667 = vmatpush.msrb.mxu1 %v1620_v6 }
 0x2ab   : > { %v1602_v31 = vpop.permute.xlu0 %1601 }
 0x2ac   : > { %v1686_v52 = vpop.permute.xlu1 %1685  ;;  %v1609_v58 = vsel %vm826_vm5, %v1594_v50, %v1602_v31  ;;  %v1613_v33 = vsel %vm826_vm5, %v1602_v31, %v1594_v50 }
 0x2ad   : > { %v1692_v43 = vsel %vm923_vm6, %v1678_v41, %v1686_v52  ;;  %v1696_v46 = vsel %vm923_vm6, %v1686_v52, %v1678_v41  ;;  %v1617_v35 = vmul.f32 %v1609_v58, %v2735_v48  ;;  %v1618_v2 = vmul.f32 %v1613_v33, %v2737_v60 }
 0x2ae   : > { %v1701_v1 = vmul.f32 %v1692_v43, %v2757_v45  ;;  %v1702_v20 = vmul.f32 %v1696_v46, %v2759_v9 }
 0x2af   : > { %1648 = vmatpush.msrb.mxu0 %v1617_v35  ;;  %1668 = vmatpush.msrb.mxu1 %v1618_v2 }
 0x2b0   : > { %1729 = vmatpush.msrb.mxu2 %v1701_v1  ;;  %1749 = vmatpush.msrb.mxu3 %v1702_v20 }
 0x2b1   : > { %1952 = vmatmul.msk.f32.vlgmr.msrb.gmra.mxu0 %vm1218_vm8, %v1630_v37  ;;  %1953 = vmatmul.msk.f32.vlgmr.msrb.gmra.mxu1 %vm1218_vm8, %v1630_v37 }
 0x2b3   : > { %v1764_v39 = vpop.permute.xlu0 %1763 }
 0x2b4   : > { %v1676_v34 = vpop.permute.xlu1 %1675 }
 0x2b5   : > { %v1691_v48 = vsel %vm923_vm6, %v1676_v34, %v1684_v38  ;;  %v1695_v60 = vsel %vm923_vm6, %v1684_v38, %v1676_v34 }
 0x2b6   : > { %v1699_v10 = vmul.f32 %v1691_v48, %v2757_v45  ;;  %v1700_v14 = vmul.f32 %v1695_v60, %v2759_v9  ;;  %v1770_v9 = vpop.permute.xlu2 %1769 }
 0x2b8   : > { %1730 = vmatpush.msrb.mxu2 %v1699_v10  ;;  %1750 = vmatpush.msrb.mxu3 %v1700_v14 }
 0x2bb   : > { %v1712_v49 = vpop.permute.xlu0 %1711 }
 0x2bc   : > { %v1772_v54 = vpop.permute.xlu1 %1771  ;;  %1954 = vmatmul.msk.f32.vlgmr.msrb.gmra.mxu2 %vm1218_vm8, %v1712_v49  ;;  %1955 = vmatmul.msk.f32.vlgmr.msrb.gmra.mxu3 %vm1218_vm8, %v1712_v49 }
 0x2bd   : > { %v1776_v21 = vsel %vm1020_vm7, %v1764_v39, %v1772_v54  ;;  %v1780_v11 = vsel %vm1020_vm7, %v1772_v54, %v1764_v39 }
 0x2be   : > { %v1787_v22 = vmul.f32 %v1776_v21, %v2789_v57  ;;  %v1788_v45 = vmul.f32 %v1780_v11, %v2787_v59  ;;  %v1758_v62 = vpop.permute.xlu2 %1757 }
 0x2c0   : > { %1805 = vmatpush.msra.mxu0 %v1787_v22  ;;  %1825 = vmatpush.msra.mxu1 %v1788_v45  ;;  %v1238_v36 = vpop.f32.mrf.mxu0 }
 0x2c1   : > { %v1258_v25 = vpop.f32.mrf.mxu1 }
 0x2c3   : > { %v1760_v47 = vpop.permute.xlu0 %1759 }
 0x2c4   : > { %v1762_v42 = vpop.permute.xlu1 %1761 }
 0x2c5   : > { %v1775_v5 = vsel %vm1020_vm7, %v1762_v42, %v1770_v9  ;;  %v1779_v16 = vsel %vm1020_vm7, %v1770_v9, %v1762_v42  ;;  %v1280_v51 = vpop.f32.mrf.mxu2 }
 0x2c6   : > { %v1785_v8 = vmul.f32 %v1775_v5, %v2789_v57  ;;  %v1786_v53 = vmul.f32 %v1779_v16, %v2787_v59  ;;  %v1300_v50 = vpop.f32.mrf.mxu3  ;;  %v1281_v4 = vadd.f32 %v1280_v51, %v1238_v36 }
 0x2c7   : > { %v1301_v30 = vadd.f32 %v1300_v50, %v1258_v25 }
 0x2c8   : > { %1806 = vmatpush.msra.mxu0 %v1785_v8  ;;  %1826 = vmatpush.msra.mxu1 %v1786_v53 }
 0x2cb   : > { %v1766_v0 = vpop.permute.xlu0 %1765 }
 0x2cc   : > { %v1768_v17 = vpop.permute.xlu1 %1767  ;;  %v1773_v55 = vsel %vm1020_vm7, %v1758_v62, %v1766_v0  ;;  %v1777_v12 = vsel %vm1020_vm7, %v1766_v0, %v1758_v62 }
 0x2cd   : > { %v1774_v23 = vsel %vm1020_vm7, %v1760_v47, %v1768_v17  ;;  %v1778_v26 = vsel %vm1020_vm7, %v1768_v17, %v1760_v47  ;;  %v1781_v28 = vmul.f32 %v1773_v55, %v2789_v57  ;;  %v1782_v19 = vmul.f32 %v1777_v12, %v2787_v59 }
 0x2ce   : > { %v1783_v56 = vmul.f32 %v1774_v23, %v2789_v57  ;;  %v1784_v18 = vmul.f32 %v1778_v26, %v2787_v59 }
 0x2d0   : > { %1807 = vmatpush.msra.mxu0 %v1783_v56  ;;  %1827 = vmatpush.msra.mxu1 %v1784_v18 }
 0x2d2   : > { %1808 = vmatpush.msra.mxu0 %v1781_v28  ;;  %1828 = vmatpush.msra.mxu1 %v1782_v19 }
 0x2d3   : > { %1956 = vmatmul.msk.f32.vlgmr.msra.gmra.mxu0 %vm1218_vm8, %v1789_v13  ;;  %1957 = vmatmul.msk.f32.vlgmr.msra.gmra.mxu1 %vm1218_vm8, %v1789_v13 }
 0x2d4   : > { %v1839_v34 = vpop.permute.xlu1 %1838 }
 0x2e6   : > { %v1360_v7 = vpop.f32.mrf.mxu0  ;;  %v1380_v57 = vpop.f32.mrf.mxu1 }
 0x2e7   : > { %v1383_v61 = vadd.f32 %v1360_v7, %v1281_v4  ;;  %v1384_v40 = vadd.f32 %v1380_v57, %v1301_v30 }
 0x2ef   : > { %v1488_v27 = vpop.f32.mrf.mxu0  ;;  %v1508_v24 = vpop.f32.mrf.mxu1 }
 0x2f7   : > { %v1442_v15 = vpop.f32.mrf.mxu2  ;;  %v1462_v59 = vpop.f32.mrf.mxu3 }
 0x2f8   : > { %v1465_v3 = vadd.f32 %v1442_v15, %v1383_v61  ;;  %v1466_v29 = vadd.f32 %v1462_v59, %v1384_v40 }
 0x2fa   : > { %v1511_v44 = vadd.f32 %v1488_v27, %v1465_v3  ;;  %v1512_v6 = vadd.f32 %v1508_v24, %v1466_v29 }
 0x30e   : > { %v1568_v63 = vpop.f32.mrf.mxu2  ;;  %v1588_v41 = vpop.f32.mrf.mxu3 }
 0x30f   : > { %v1591_v31 = vadd.f32 %v1568_v63, %v1511_v44  ;;  %v1592_v52 = vadd.f32 %v1588_v41, %v1512_v6 }
 0x32e   : > { %v1650_v32 = vpop.f32.mrf.mxu0  ;;  %v1670_v38 = vpop.f32.mrf.mxu1 }
 0x32f   : > { %v1673_v43 = vadd.f32 %v1650_v32, %v1591_v31  ;;  %v1674_v46 = vadd.f32 %v1670_v38, %v1592_v52 }
 0x33f   : > { %v1732_v58 = vpop.f32.mrf.mxu2  ;;  %v1752_v33 = vpop.f32.mrf.mxu3 }
 0x340   : > { %v1755_v35 = vadd.f32 %v1732_v58, %v1673_v43  ;;  %v1756_v2 = vadd.f32 %v1752_v33, %v1674_v46 }
 0x350   : > { %v1810_v1 = vpop.f32.mrf.mxu0  ;;  %v1830_v20 = vpop.f32.mrf.mxu1 }
 0x351   : > { %v1833_v37 = vadd.f32 %v1810_v1, %v1755_v35  ;;  %v1834_v39 = vadd.f32 %v1830_v20, %v1756_v2 }
 0x353   : > { %v1842_v48 = vadd.f32 %v1839_v34, %v1834_v39  ;;  %v1841_v60 = vadd.f32 %v1839_v34, %v1833_v37 }
 0x355   : > { %v1845_v10 = vrot.slane %v1842_v48, 6 }
 0x357   : > { %v1847_v14 = vsel %vm1846_vm9, %v1841_v60, %v1845_v10 }
 0x358   : > { %1849 = vst [vmem:[%s245_s15] sm:$0xf] %v1847_v14 }
 0x359   : > { %2114 = shalt.err (!%p2111_p3)
}
 0x35a   : > { %1964 = dma.vmem_to_hbm [thread:$0]  (%p2253_p5), %s1865_s10, 64, %s1867_s16, %s1851_s25  }
 0x35b PF: > { %p1970_p4 = scmp.ge.s32.totalorder %s2149_s24, 2  ;;  %s1878_s29 = sand.u32 1, %s2137_s21  }
 0x35c   : > { %s1879_s20 = scalar_lea.sflag [#allocation3], %s1878_s29 }
 0x35d   : > { %p1967_p7 = pnand %p1970_p4, %p2257_p6 }
 0x35f   : > { %p1968_p8 = pneg %p1967_p7 }
 0x361   : > { %2132 = dma.done.wait (%p1968_p8), %s1879_s20, 64  }
 0x362   : > { %2134 = vsyncadd (%p1968_p8), %s1879_s20, 4294967232  ;;  %p16_p9 = scmp.ge.s32.totalorder %s2240_s27, 4   ;;  %s3273_s21 = smov %s2141_s22 }
 0x363   : > { %s3274_s22 = smov %s2145_s23  ;;  %s3275_s23 = smov %s2251_s30 }
 0x364   : > { %s3276_s24 = smov %s2240_s27  ;;  %18 = sbr.rel (!%p16_p9) target bundleno = 3 (0x3), region = 86 }
 0x369   :  { %1885 = vsyncpa [#allocation3], 1 }
 0x36a   :  { %1887 = vsyncpa [#allocation3 + $0x1], 1 }

</bundles_post_ra>
